<compile_context>
chip_gen: v5e
topology: v5e:2x2
jax: 0.10.0
libtpu: 0.0.40
codegen_flags: <defaults>
</compile_context>

<pallas_src>
import math
from functools import partial

import numpy as np
import jax
import jax.numpy as jnp
from jax import lax
from jax.experimental import pallas as pl
from jax.experimental.pallas import tpu as pltpu


def make_kernel(num_heads, dh, G, N, S):
    """Fused projections + MHA + out-proj + ln1 + FFN + ln2 for one batch group."""
    GN, GS = G * N, G * S

    def kernel(x_ref, c_ref, bias_ref, wsq_ref, wkv_ref, vec_ref, out_ref, o_scr):
        x = x_ref[...]          # [G*N, F]   padded graph nodes of this group
        c = c_ref[...]          # [G*S, L]   conditioning of this group
        mbias = bias_ref[...]   # [1, G*S]   additive key-padding bias (0 / -1e30)

        if G > 1:
            # Same-batch block-diagonal mask across the grouped batches,
            # generated in-kernel (no HBM mask array).
            row_b = lax.broadcasted_iota(jnp.int32, (GN, GS), 0) // N
            col_b = lax.broadcasted_iota(jnp.int32, (GN, GS), 1) // S
            mbias = mbias + jnp.where(row_b == col_b, 0.0, -1e30).astype(jnp.float32)

        def vec(i):             # [1, F] bias / gain row (static slice, free)
            return vec_ref[i:i + 1, :]

        # Fused projections (module q/k/v dense + MHA in-proj; weights are
        # pre-transposed, softmax 1/sqrt(dh) folded into the query weight+bias).
        q2 = jnp.dot(x, wsq_ref[0], preferred_element_type=jnp.float32) + vec(0)
        k2 = jnp.dot(c, wkv_ref[0], preferred_element_type=jnp.float32) + vec(1)
        v2 = jnp.dot(c, wkv_ref[1], preferred_element_type=jnp.float32) + vec(2)

        # Per-head attention; head outputs land in their lane slices of o_scr
        # so the out-projection is ONE K=F matmul after the loop.
        for h in range(num_heads):
            sl = slice(h * dh, (h + 1) * dh)
            s = lax.dot_general(q2[:, sl], k2[:, sl], (((1,), (1,)), ((), ())),
                                preferred_element_type=jnp.float32)   # q @ k^T
            s = s + mbias
            m = jnp.max(s, axis=-1, keepdims=True)
            e = jnp.exp(s - m)
            p = e * pl.reciprocal(jnp.sum(e, axis=-1, keepdims=True), approx=False)
            o_scr[:, sl] = jnp.dot(p, v2[:, sl], preferred_element_type=jnp.float32)

        attn = jnp.dot(o_scr[...], wsq_ref[1],
                       preferred_element_type=jnp.float32) + vec(3)   # out-proj
        # TODO(synk): attention dropout (p=0.1) omitted -- eval-mode semantics.

        def layernorm(z, gi, bi):
            mu = jnp.mean(z, axis=-1, keepdims=True)
            zc = z - mu
            var = jnp.mean(zc * zc, axis=-1, keepdims=True)
            return zc * lax.rsqrt(var + 1e-5) * vec(gi) + vec(bi)

        h1 = layernorm(attn + x, 4, 5)                                # ln1
        ff = jnp.dot(h1, wsq_ref[2], preferred_element_type=jnp.float32) + vec(6)
        ff = jnp.where(ff >= 0.0, ff, 0.01 * ff)                      # LeakyReLU
        out_ref[...] = layernorm(ff + h1, 7, 8)                       # ln2

    return kernel


def pack_params(params, num_heads):
    """Host-side: fuse projection chains, fold softmax scale, transpose, pack."""
    (wq, bq, wk, bk, wv, bv, wiq, biq, wik, bik, wiv, biv,
     wo, bo, g1, be1, w1, b1, g2, be2) = [jnp.asarray(p, jnp.float32) for p in params]
    F = wq.shape[0]
    dh = F // num_heads
    scale = 1.0 / math.sqrt(dh)

    wq_f_t = (wq.T @ wiq.T) * scale             # [F, F]   fused q proj, scaled
    bq_f = (bq @ wiq.T + biq) * scale           # [F]
    wk_f_t = wk.T @ wik.T                       # [L, F]   fused k proj
    bk_f = bk @ wik.T + bik
    wv_f_t = wv.T @ wiv.T                       # [L, F]   fused v proj
    bv_f = bv @ wiv.T + biv

    wsq = jnp.stack([wq_f_t, wo.T, w1.T])                            # [3, F, F]
    wkv = jnp.stack([wk_f_t, wv_f_t])                                # [2, L, F]
    vecs = jnp.stack([bq_f, bk_f, bv_f, bo, g1, be1, b1, g2, be2])   # [9, F]
    return wsq, wkv, vecs


def pad_graph_batch(graph_nodes, graph_batch):
    """torch_geometric unbatch + zero-pad + stack, done on host (numpy)."""
    graph_nodes = np.asarray(graph_nodes, np.float32)
    graph_batch = np.asarray(graph_batch)
    B = int(graph_batch.max()) + 1
    counts = [int((graph_batch == b).sum()) for b in range(B)]
    N = max(counts)
    Fdim = graph_nodes.shape[1]
    batch_nodes = np.zeros((B, N, Fdim), np.float32)
    node_mask = np.zeros((B, N), bool)
    for b in range(B):
        idx = np.where(graph_batch == b)[0]
        batch_nodes[b, :len(idx)] = graph_nodes[idx]
        node_mask[b, :len(idx)] = True
    return batch_nodes, node_mask


def _pick_group(B, S):
    """Batches per grid step: aim toward >=128 key lanes in the softmax while
    keeping >=2 parallel grid steps (v7x megacore) when possible."""
    target = max(1, 128 // max(int(S), 1))
    best = 1
    for g in range(1, min(B, target) + 1):
        if B % g == 0 and B // g >= 2:
            best = g
    return best


@partial(jax.jit, static_argnames=("num_heads", "single_buffer_weights"))
def cross_attention_graph_block_padded(batch_nodes, cond, cond_mask, params,
                                       num_heads, single_buffer_weights=True):
    """Per-batch-group parallel Pallas kernel over the padded batch."""
    batch_nodes = jnp.asarray(batch_nodes, jnp.float32)
    cond = jnp.asarray(cond, jnp.float32)
    B, N, F = batch_nodes.shape
    S, L = cond.shape[1], cond.shape[2]
    dh = F // num_heads

    G = _pick_group(B, S)                # batches per grid step
    num_groups = B // G
    GN, GS = G * N, G * S

    wsq, wkv, vecs = pack_params(params, num_heads)

    x_g = batch_nodes.reshape(num_groups, GN, F)
    c_g = cond.reshape(num_groups, GS, L)
    # True in cond_mask => ignore that key (PyTorch key_padding_mask semantics).
    kbias = jnp.where(jnp.asarray(cond_mask, bool), -1e30, 0.0).astype(jnp.float32)
    kbias = kbias.reshape(num_groups, 1, GS)

    # Weights have a constant block index across the grid: single-buffer them.
    w_kw = dict(pipeline_mode=pl.Buffered(1)) if single_buffer_weights else {}

    out_g = pl.pallas_call(
        make_kernel(num_heads, dh, G, N, S),
        out_shape=jax.ShapeDtypeStruct((num_groups, GN, F), jnp.float32),
        grid=(num_groups,),
        in_specs=[
            pl.BlockSpec((None, GN, F), lambda i: (i, 0, 0)),
            pl.BlockSpec((None, GS, L), lambda i: (i, 0, 0)),
            pl.BlockSpec((None, 1, GS), lambda i: (i, 0, 0)),
            pl.BlockSpec((3, F, F), lambda i: (0, 0, 0), **w_kw),
            pl.BlockSpec((2, L, F), lambda i: (0, 0, 0), **w_kw),
            pl.BlockSpec((9, F), lambda i: (0, 0), **w_kw),
        ],
        out_specs=pl.BlockSpec((None, GN, F), lambda i: (i, 0, 0)),
        scratch_shapes=[pltpu.VMEM((GN, F), jnp.float32)],
        compiler_params=pltpu.CompilerParams(
            dimension_semantics=("parallel",)),
    )(x_g, c_g, kbias, wsq, wkv, vecs)
    return out_g.reshape(B, N, F)


def reference_padded(batch_nodes, cond, cond_mask, params, num_heads):
    """Pure-JAX reference of the same math (unfused weights) for checking."""
    (wq, bq, wk, bk, wv, bv, wiq, biq, wik, bik, wiv, biv,
     wo, bo, g1, be1, w1, b1, g2, be2) = params
    x = jnp.asarray(batch_nodes, jnp.float32)
    c = jnp.asarray(cond, jnp.float32)
    q = x @ wq.T + bq
    k = c @ wk.T + bk
    v = c @ wv.T + bv
    q2 = q @ wiq.T + biq
    k2 = k @ wik.T + bik
    v2 = v @ wiv.T + biv
    B, N, F = q2.shape
    S = k2.shape[1]
    dh = F // num_heads
    q2 = q2.reshape(B, N, num_heads, dh).transpose(0, 2, 1, 3)
    k2 = k2.reshape(B, S, num_heads, dh).transpose(0, 2, 1, 3)
    v2 = v2.reshape(B, S, num_heads, dh).transpose(0, 2, 1, 3)
    s = jnp.einsum('bhnd,bhsd->bhns', q2, k2) / math.sqrt(dh)
    s = s + jnp.where(jnp.asarray(cond_mask, bool), -jnp.inf, 0.0)[:, None, None, :]
    p = jax.nn.softmax(s, axis=-1)
    o = jnp.einsum('bhns,bhsd->bhnd', p, v2).transpose(0, 2, 1, 3).reshape(B, N, F)
    o = o @ wo.T + bo

    def ln(z, g, be):
        mu = z.mean(-1, keepdims=True)
        var = ((z - mu) ** 2).mean(-1, keepdims=True)
        return (z - mu) / jnp.sqrt(var + 1e-5) * g + be

    h1 = ln(o + x, g1, be1)
    ff = h1 @ w1.T + b1
    ff = jnp.where(ff >= 0, ff, 0.01 * ff)
    return ln(ff + h1, g2, be2)


if __name__ == "__main__":
    num_heads = 4
    F = 32   # node_feature_size
    L = 16   # latent_size
    S = 8    # conditioning sequence length
    node_counts = [10, 16]          # nodes per graph -> B = 2
    B = len(node_counts)
    total_nodes = sum(node_counts)

    key = jax.random.PRNGKey(0)
    keys = jax.random.split(key, 12)

    graph_nodes = jax.random.normal(keys[0], (total_nodes, F), jnp.float32)
    graph_batch = np.concatenate(
        [np.full(c, i, np.int32) for i, c in enumerate(node_counts)])
    conditioning_vector = jax.random.normal(keys[1], (B, S, L), jnp.float32)
    conditioning_attention_mask = np.zeros((B, S), bool)
    conditioning_attention_mask[0, -2:] = True   # ignore last 2 tokens of batch 0

    def init_linear(k, out_f, in_f):
        k1, k2 = jax.random.split(k)
        bound = 1.0 / math.sqrt(in_f)
        w = jax.random.uniform(k1, (out_f, in_f), jnp.float32, -bound, bound)
        b = jax.random.uniform(k2, (out_f,), jnp.float32, -bound, bound)
        return w, b

    wq, bq = init_linear(keys[2], F, F)      # q_dense
    wk, bk = init_linear(keys[3], F, L)      # k_dense
    wv, bv = init_linear(keys[4], F, L)      # v_dense
    wiq, biq = init_linear(keys[5], F, F)    # MHA in_proj (q slice)
    wik, bik = init_linear(keys[6], F, F)    # MHA in_proj (k slice)
    wiv, biv = init_linear(keys[7], F, F)    # MHA in_proj (v slice)
    wo, bo = init_linear(keys[8], F, F)      # MHA out_proj
    w1, b1 = init_linear(keys[9], F, F)      # dense1
    g1 = jnp.ones((F,), jnp.float32); be1 = jnp.zeros((F,), jnp.float32)   # ln1
    g2 = jnp.ones((F,), jnp.float32); be2 = jnp.zeros((F,), jnp.float32)   # ln2

    params = (wq, bq, wk, bk, wv, bv, wiq, biq, wik, bik, wiv, biv,
              wo, bo, g1, be1, w1, b1, g2, be2)

    # unbatch/pad glue (mirrors the torch loop in forward)
    batch_nodes, node_mask = pad_graph_batch(graph_nodes, graph_batch)

    try:
        out_padded = cross_attention_graph_block_padded(
            batch_nodes, conditioning_vector, conditioning_attention_mask,
            params, num_heads=num_heads, single_buffer_weights=True)
        out_padded = jax.block_until_ready(out_padded)
    except Exception:
        # This JAX build rejects pipeline_mode=pl.Buffered(1); plain specs
        # (default double-buffered weights) are functionally identical.
        out_padded = cross_attention_graph_block_padded(
            batch_nodes, conditioning_vector, conditioning_attention_mask,
            params, num_heads=num_heads, single_buffer_weights=False)
        out_padded = jax.block_until_ready(out_padded)

    # un-pad back to the flat node list (== Batch.from_data_list(graphs).x)
    out = jnp.concatenate([out_padded[b][node_mask[b]] for b in range(B)], axis=0)
    out = jax.block_until_ready(out)

    # correctness check against a pure-JAX reference
    ref_padded = reference_padded(batch_nodes, conditioning_vector,
                                  conditioning_attention_mask, params, num_heads)
    ref = jnp.concatenate([ref_padded[b][node_mask[b]] for b in range(B)], axis=0)

    assert out.shape == (total_nodes, F), out.shape
    assert np.allclose(np.asarray(out), np.asarray(ref), rtol=1e-4, atol=1e-4), \
        float(np.max(np.abs(np.asarray(out) - np.asarray(ref))))
    print("KERNEL_OK")
</pallas_src>

<mosaic_0001>
module attributes {stable_mosaic.version = 11 : i64} {
  func.func @kernel(%arg0: i32, %arg1: memref<1x16x32xf32, #tpu.memory_space<vmem>>, %arg2: memref<1x8x16xf32, #tpu.memory_space<vmem>>, %arg3: memref<1x1x8xf32, #tpu.memory_space<vmem>>, %arg4: memref<3x32x32xf32, #tpu.memory_space<vmem>>, %arg5: memref<2x16x32xf32, #tpu.memory_space<vmem>>, %arg6: memref<9x32xf32, #tpu.memory_space<vmem>>, %arg7: memref<1x16x32xf32, #tpu.memory_space<vmem>>, %arg8: memref<16x32xf32, #tpu.memory_space<vmem>>) attributes {dimension_semantics = [#tpu.dimension_semantics<parallel>], iteration_bounds = array<i64: 2>, scalar_prefetch = 0 : i64, scratch_operands = 1 : i64, tpu.core_type = #tpu.core_type<tc>, window_params = [{transform_indices = @transform_0, window_bounds = array<i64: 1, 16, 32>}, {transform_indices = @transform_1, window_bounds = array<i64: 1, 8, 16>}, {transform_indices = @transform_2, window_bounds = array<i64: 1, 1, 8>}, {pipeline_mode = #tpu.pipeline_mode<synchronous>, transform_indices = @transform_3, window_bounds = array<i64: 3, 32, 32>}, {pipeline_mode = #tpu.pipeline_mode<synchronous>, transform_indices = @transform_4, window_bounds = array<i64: 2, 16, 32>}, {pipeline_mode = #tpu.pipeline_mode<synchronous>, transform_indices = @transform_5, window_bounds = array<i64: 9, 32>}, {transform_indices = @transform_6, window_bounds = array<i64: 1, 16, 32>}]} {
    %c0 = arith.constant 0 : index
    %c0_0 = arith.constant 0 : index
    %c0_1 = arith.constant 0 : index
    %0 = vector.load %arg1[%c0, %c0_0, %c0_1] : memref<1x16x32xf32, #tpu.memory_space<vmem>>, vector<1x16x32xf32>
    %1 = vector.shape_cast %0 : vector<1x16x32xf32> to vector<16x32xf32>
    %c0_2 = arith.constant 0 : index
    %c0_3 = arith.constant 0 : index
    %c0_4 = arith.constant 0 : index
    %2 = vector.load %arg2[%c0_2, %c0_3, %c0_4] : memref<1x8x16xf32, #tpu.memory_space<vmem>>, vector<1x8x16xf32>
    %3 = vector.shape_cast %2 : vector<1x8x16xf32> to vector<8x16xf32>
    %c0_5 = arith.constant 0 : index
    %c0_6 = arith.constant 0 : index
    %c0_7 = arith.constant 0 : index
    %4 = vector.load %arg3[%c0_5, %c0_6, %c0_7] : memref<1x1x8xf32, #tpu.memory_space<vmem>>, vector<1x1x8xf32>
    %5 = vector.shape_cast %4 : vector<1x1x8xf32> to vector<1x8xf32>
    %c0_8 = arith.constant 0 : index
    %c0_9 = arith.constant 0 : index
    %c0_10 = arith.constant 0 : index
    %6 = vector.load %arg4[%c0_8, %c0_9, %c0_10] : memref<3x32x32xf32, #tpu.memory_space<vmem>>, vector<1x32x32xf32>
    %7 = vector.shape_cast %6 : vector<1x32x32xf32> to vector<32x32xf32>
    %cst = arith.constant dense<0.000000e+00> : vector<16x32xf32>
    %8 = tpu.matmul %1, %7, %cst {dimension_numbers = #tpu.dot_dimension_numbers<[1], [0], [0], [1], [0, 0, 1, 1], [], []>} : vector<16x32xf32>, vector<32x32xf32>, vector<16x32xf32> -> vector<16x32xf32>
    %c0_11 = arith.constant 0 : index
    %c0_12 = arith.constant 0 : index
    %9 = vector.load %arg6[%c0_11, %c0_12] : memref<9x32xf32, #tpu.memory_space<vmem>>, vector<1x32xf32>
    %10 = vector.broadcast %9 : vector<1x32xf32> to vector<16x32xf32>
    %11 = arith.addf %8, %10 : vector<16x32xf32>
    %c0_13 = arith.constant 0 : index
    %c0_14 = arith.constant 0 : index
    %c0_15 = arith.constant 0 : index
    %12 = vector.load %arg5[%c0_13, %c0_14, %c0_15] : memref<2x16x32xf32, #tpu.memory_space<vmem>>, vector<1x16x32xf32>
    %13 = vector.shape_cast %12 : vector<1x16x32xf32> to vector<16x32xf32>
    %cst_16 = arith.constant dense<0.000000e+00> : vector<8x32xf32>
    %14 = tpu.matmul %3, %13, %cst_16 {dimension_numbers = #tpu.dot_dimension_numbers<[1], [0], [0], [1], [0, 0, 1, 1], [], []>} : vector<8x16xf32>, vector<16x32xf32>, vector<8x32xf32> -> vector<8x32xf32>
    %c1 = arith.constant 1 : index
    %c0_17 = arith.constant 0 : index
    %15 = vector.load %arg6[%c1, %c0_17] : memref<9x32xf32, #tpu.memory_space<vmem>>, vector<1x32xf32>
    %16 = vector.broadcast %15 : vector<1x32xf32> to vector<8x32xf32>
    %17 = arith.addf %14, %16 : vector<8x32xf32>
    %c1_18 = arith.constant 1 : index
    %c0_19 = arith.constant 0 : index
    %c0_20 = arith.constant 0 : index
    %18 = vector.load %arg5[%c1_18, %c0_19, %c0_20] : memref<2x16x32xf32, #tpu.memory_space<vmem>>, vector<1x16x32xf32>
    %19 = vector.shape_cast %18 : vector<1x16x32xf32> to vector<16x32xf32>
    %cst_21 = arith.constant dense<0.000000e+00> : vector<8x32xf32>
    %20 = tpu.matmul %3, %19, %cst_21 {dimension_numbers = #tpu.dot_dimension_numbers<[1], [0], [0], [1], [0, 0, 1, 1], [], []>} : vector<8x16xf32>, vector<16x32xf32>, vector<8x32xf32> -> vector<8x32xf32>
    %c2 = arith.constant 2 : index
    %c0_22 = arith.constant 0 : index
    %21 = vector.load %arg6[%c2, %c0_22] : memref<9x32xf32, #tpu.memory_space<vmem>>, vector<1x32xf32>
    %22 = vector.broadcast %21 : vector<1x32xf32> to vector<8x32xf32>
    %23 = arith.addf %20, %22 : vector<8x32xf32>
    %24 = vector.extract_strided_slice %11 {offsets = [0, 0], sizes = [16, 8], strides = [1, 1]} : vector<16x32xf32> to vector<16x8xf32>
    %25 = vector.extract_strided_slice %17 {offsets = [0, 0], sizes = [8, 8], strides = [1, 1]} : vector<8x32xf32> to vector<8x8xf32>
    %cst_23 = arith.constant dense<0.000000e+00> : vector<16x8xf32>
    %26 = tpu.matmul %24, %25, %cst_23 {dimension_numbers = #tpu.dot_dimension_numbers<[1], [1], [0], [0], [0, 0, 1, 0], [], []>} : vector<16x8xf32>, vector<8x8xf32>, vector<16x8xf32> -> vector<16x8xf32>
    %27 = vector.broadcast %5 : vector<1x8xf32> to vector<16x8xf32>
    %28 = arith.addf %26, %27 : vector<16x8xf32>
    %cst_24 = arith.constant dense<0xFF800000> : vector<16xf32>
    %29 = vector.multi_reduction <maximumf>, %28, %cst_24 [1] : vector<16x8xf32> to vector<16xf32>
    %30 = vector.shape_cast %29 : vector<16xf32> to vector<16x1xf32>
    %31 = vector.broadcast %30 : vector<16x1xf32> to vector<16x8xf32>
    %32 = arith.subf %28, %31 : vector<16x8xf32>
    %33 = math.exp %32 : vector<16x8xf32>
    %cst_25 = arith.constant dense<0.000000e+00> : vector<16xf32>
    %34 = vector.multi_reduction <add>, %33, %cst_25 [1] : vector<16x8xf32> to vector<16xf32>
    %35 = vector.shape_cast %34 : vector<16xf32> to vector<16x1xf32>
    %36 = tpu.reciprocal %35 : vector<16x1xf32> -> vector<16x1xf32>
    %37 = vector.broadcast %36 : vector<16x1xf32> to vector<16x8xf32>
    %38 = arith.mulf %33, %37 : vector<16x8xf32>
    %39 = vector.extract_strided_slice %23 {offsets = [0, 0], sizes = [8, 8], strides = [1, 1]} : vector<8x32xf32> to vector<8x8xf32>
    %cst_26 = arith.constant dense<0.000000e+00> : vector<16x8xf32>
    %40 = tpu.matmul %38, %39, %cst_26 {dimension_numbers = #tpu.dot_dimension_numbers<[1], [0], [0], [1], [0, 0, 1, 1], [], []>} : vector<16x8xf32>, vector<8x8xf32>, vector<16x8xf32> -> vector<16x8xf32>
    %c0_27 = arith.constant 0 : index
    %c0_28 = arith.constant 0 : index
    %41 = vector.load %arg8[%c0_27, %c0_28] : memref<16x32xf32, #tpu.memory_space<vmem>>, vector<16x8xf32>
    tpu.vector_store %arg8[%c0_27, %c0_28], %40 {strides = array<i32>} : memref<16x32xf32, #tpu.memory_space<vmem>>, vector<16x8xf32>,
    %42 = vector.extract_strided_slice %11 {offsets = [0, 8], sizes = [16, 8], strides = [1, 1]} : vector<16x32xf32> to vector<16x8xf32>
    %43 = vector.extract_strided_slice %17 {offsets = [0, 8], sizes = [8, 8], strides = [1, 1]} : vector<8x32xf32> to vector<8x8xf32>
    %cst_29 = arith.constant dense<0.000000e+00> : vector<16x8xf32>
    %44 = tpu.matmul %42, %43, %cst_29 {dimension_numbers = #tpu.dot_dimension_numbers<[1], [1], [0], [0], [0, 0, 1, 0], [], []>} : vector<16x8xf32>, vector<8x8xf32>, vector<16x8xf32> -> vector<16x8xf32>
    %45 = vector.broadcast %5 : vector<1x8xf32> to vector<16x8xf32>
    %46 = arith.addf %44, %45 : vector<16x8xf32>
    %cst_30 = arith.constant dense<0xFF800000> : vector<16xf32>
    %47 = vector.multi_reduction <maximumf>, %46, %cst_30 [1] : vector<16x8xf32> to vector<16xf32>
    %48 = vector.shape_cast %47 : vector<16xf32> to vector<16x1xf32>
    %49 = vector.broadcast %48 : vector<16x1xf32> to vector<16x8xf32>
    %50 = arith.subf %46, %49 : vector<16x8xf32>
    %51 = math.exp %50 : vector<16x8xf32>
    %cst_31 = arith.constant dense<0.000000e+00> : vector<16xf32>
    %52 = vector.multi_reduction <add>, %51, %cst_31 [1] : vector<16x8xf32> to vector<16xf32>
    %53 = vector.shape_cast %52 : vector<16xf32> to vector<16x1xf32>
    %54 = tpu.reciprocal %53 : vector<16x1xf32> -> vector<16x1xf32>
    %55 = vector.broadcast %54 : vector<16x1xf32> to vector<16x8xf32>
    %56 = arith.mulf %51, %55 : vector<16x8xf32>
    %57 = vector.extract_strided_slice %23 {offsets = [0, 8], sizes = [8, 8], strides = [1, 1]} : vector<8x32xf32> to vector<8x8xf32>
    %cst_32 = arith.constant dense<0.000000e+00> : vector<16x8xf32>
    %58 = tpu.matmul %56, %57, %cst_32 {dimension_numbers = #tpu.dot_dimension_numbers<[1], [0], [0], [1], [0, 0, 1, 1], [], []>} : vector<16x8xf32>, vector<8x8xf32>, vector<16x8xf32> -> vector<16x8xf32>
    %c0_33 = arith.constant 0 : index
    %c8 = arith.constant 8 : index
    %59 = vector.load %arg8[%c0_33, %c8] : memref<16x32xf32, #tpu.memory_space<vmem>>, vector<16x8xf32>
    tpu.vector_store %arg8[%c0_33, %c8], %58 {strides = array<i32>} : memref<16x32xf32, #tpu.memory_space<vmem>>, vector<16x8xf32>,
    %60 = vector.extract_strided_slice %11 {offsets = [0, 16], sizes = [16, 8], strides = [1, 1]} : vector<16x32xf32> to vector<16x8xf32>
    %61 = vector.extract_strided_slice %17 {offsets = [0, 16], sizes = [8, 8], strides = [1, 1]} : vector<8x32xf32> to vector<8x8xf32>
    %cst_34 = arith.constant dense<0.000000e+00> : vector<16x8xf32>
    %62 = tpu.matmul %60, %61, %cst_34 {dimension_numbers = #tpu.dot_dimension_numbers<[1], [1], [0], [0], [0, 0, 1, 0], [], []>} : vector<16x8xf32>, vector<8x8xf32>, vector<16x8xf32> -> vector<16x8xf32>
    %63 = vector.broadcast %5 : vector<1x8xf32> to vector<16x8xf32>
    %64 = arith.addf %62, %63 : vector<16x8xf32>
    %cst_35 = arith.constant dense<0xFF800000> : vector<16xf32>
    %65 = vector.multi_reduction <maximumf>, %64, %cst_35 [1] : vector<16x8xf32> to vector<16xf32>
    %66 = vector.shape_cast %65 : vector<16xf32> to vector<16x1xf32>
    %67 = vector.broadcast %66 : vector<16x1xf32> to vector<16x8xf32>
    %68 = arith.subf %64, %67 : vector<16x8xf32>
    %69 = math.exp %68 : vector<16x8xf32>
    %cst_36 = arith.constant dense<0.000000e+00> : vector<16xf32>
    %70 = vector.multi_reduction <add>, %69, %cst_36 [1] : vector<16x8xf32> to vector<16xf32>
    %71 = vector.shape_cast %70 : vector<16xf32> to vector<16x1xf32>
    %72 = tpu.reciprocal %71 : vector<16x1xf32> -> vector<16x1xf32>
    %73 = vector.broadcast %72 : vector<16x1xf32> to vector<16x8xf32>
    %74 = arith.mulf %69, %73 : vector<16x8xf32>
    %75 = vector.extract_strided_slice %23 {offsets = [0, 16], sizes = [8, 8], strides = [1, 1]} : vector<8x32xf32> to vector<8x8xf32>
    %cst_37 = arith.constant dense<0.000000e+00> : vector<16x8xf32>
    %76 = tpu.matmul %74, %75, %cst_37 {dimension_numbers = #tpu.dot_dimension_numbers<[1], [0], [0], [1], [0, 0, 1, 1], [], []>} : vector<16x8xf32>, vector<8x8xf32>, vector<16x8xf32> -> vector<16x8xf32>
    %c0_38 = arith.constant 0 : index
    %c16 = arith.constant 16 : index
    %77 = vector.load %arg8[%c0_38, %c16] : memref<16x32xf32, #tpu.memory_space<vmem>>, vector<16x8xf32>
    tpu.vector_store %arg8[%c0_38, %c16], %76 {strides = array<i32>} : memref<16x32xf32, #tpu.memory_space<vmem>>, vector<16x8xf32>,
    %78 = vector.extract_strided_slice %11 {offsets = [0, 24], sizes = [16, 8], strides = [1, 1]} : vector<16x32xf32> to vector<16x8xf32>
    %79 = vector.extract_strided_slice %17 {offsets = [0, 24], sizes = [8, 8], strides = [1, 1]} : vector<8x32xf32> to vector<8x8xf32>
    %cst_39 = arith.constant dense<0.000000e+00> : vector<16x8xf32>
    %80 = tpu.matmul %78, %79, %cst_39 {dimension_numbers = #tpu.dot_dimension_numbers<[1], [1], [0], [0], [0, 0, 1, 0], [], []>} : vector<16x8xf32>, vector<8x8xf32>, vector<16x8xf32> -> vector<16x8xf32>
    %81 = vector.broadcast %5 : vector<1x8xf32> to vector<16x8xf32>
    %82 = arith.addf %80, %81 : vector<16x8xf32>
    %cst_40 = arith.constant dense<0xFF800000> : vector<16xf32>
    %83 = vector.multi_reduction <maximumf>, %82, %cst_40 [1] : vector<16x8xf32> to vector<16xf32>
    %84 = vector.shape_cast %83 : vector<16xf32> to vector<16x1xf32>
    %85 = vector.broadcast %84 : vector<16x1xf32> to vector<16x8xf32>
    %86 = arith.subf %82, %85 : vector<16x8xf32>
    %87 = math.exp %86 : vector<16x8xf32>
    %cst_41 = arith.constant dense<0.000000e+00> : vector<16xf32>
    %88 = vector.multi_reduction <add>, %87, %cst_41 [1] : vector<16x8xf32> to vector<16xf32>
    %89 = vector.shape_cast %88 : vector<16xf32> to vector<16x1xf32>
    %90 = tpu.reciprocal %89 : vector<16x1xf32> -> vector<16x1xf32>
    %91 = vector.broadcast %90 : vector<16x1xf32> to vector<16x8xf32>
    %92 = arith.mulf %87, %91 : vector<16x8xf32>
    %93 = vector.extract_strided_slice %23 {offsets = [0, 24], sizes = [8, 8], strides = [1, 1]} : vector<8x32xf32> to vector<8x8xf32>
    %cst_42 = arith.constant dense<0.000000e+00> : vector<16x8xf32>
    %94 = tpu.matmul %92, %93, %cst_42 {dimension_numbers = #tpu.dot_dimension_numbers<[1], [0], [0], [1], [0, 0, 1, 1], [], []>} : vector<16x8xf32>, vector<8x8xf32>, vector<16x8xf32> -> vector<16x8xf32>
    %c0_43 = arith.constant 0 : index
    %c24 = arith.constant 24 : index
    %95 = vector.load %arg8[%c0_43, %c24] : memref<16x32xf32, #tpu.memory_space<vmem>>, vector<16x8xf32>
    tpu.vector_store %arg8[%c0_43, %c24], %94 {strides = array<i32>} : memref<16x32xf32, #tpu.memory_space<vmem>>, vector<16x8xf32>,
    %c0_44 = arith.constant 0 : index
    %c0_45 = arith.constant 0 : index
    %96 = vector.load %arg8[%c0_44, %c0_45] : memref<16x32xf32, #tpu.memory_space<vmem>>, vector<16x32xf32>
    %c1_46 = arith.constant 1 : index
    %c0_47 = arith.constant 0 : index
    %c0_48 = arith.constant 0 : index
    %97 = vector.load %arg4[%c1_46, %c0_47, %c0_48] : memref<3x32x32xf32, #tpu.memory_space<vmem>>, vector<1x32x32xf32>
    %98 = vector.shape_cast %97 : vector<1x32x32xf32> to vector<32x32xf32>
    %cst_49 = arith.constant dense<0.000000e+00> : vector<16x32xf32>
    %99 = tpu.matmul %96, %98, %cst_49 {dimension_numbers = #tpu.dot_dimension_numbers<[1], [0], [0], [1], [0, 0, 1, 1], [], []>} : vector<16x32xf32>, vector<32x32xf32>, vector<16x32xf32> -> vector<16x32xf32>
    %c3 = arith.constant 3 : index
    %c0_50 = arith.constant 0 : index
    %100 = vector.load %arg6[%c3, %c0_50] : memref<9x32xf32, #tpu.memory_space<vmem>>, vector<1x32xf32>
    %101 = vector.broadcast %100 : vector<1x32xf32> to vector<16x32xf32>
    %102 = arith.addf %99, %101 : vector<16x32xf32>
    %103 = arith.addf %102, %1 : vector<16x32xf32>
    %cst_51 = arith.constant dense<0.000000e+00> : vector<16xf32>
    %104 = vector.multi_reduction <add>, %103, %cst_51 [1] : vector<16x32xf32> to vector<16xf32>
    %105 = vector.shape_cast %104 : vector<16xf32> to vector<16x1xf32>
    %cst_52 = arith.constant 3.200000e+01 : f32
    %106 = vector.broadcast %cst_52 : f32 to vector<16x1xf32>
    %107 = arith.divf %105, %106 : vector<16x1xf32>
    %108 = vector.broadcast %107 : vector<16x1xf32> to vector<16x32xf32>
    %109 = arith.subf %103, %108 : vector<16x32xf32>
    %110 = arith.mulf %109, %109 : vector<16x32xf32>
    %cst_53 = arith.constant dense<0.000000e+00> : vector<16xf32>
    %111 = vector.multi_reduction <add>, %110, %cst_53 [1] : vector<16x32xf32> to vector<16xf32>
    %112 = vector.shape_cast %111 : vector<16xf32> to vector<16x1xf32>
    %cst_54 = arith.constant 3.200000e+01 : f32
    %113 = vector.broadcast %cst_54 : f32 to vector<16x1xf32>
    %114 = arith.divf %112, %113 : vector<16x1xf32>
    %cst_55 = arith.constant 9.99999974E-6 : f32
    %115 = vector.broadcast %cst_55 : f32 to vector<16x1xf32>
    %116 = arith.addf %114, %115 : vector<16x1xf32>
    %117 = math.rsqrt %116 : vector<16x1xf32>
    %118 = vector.broadcast %117 : vector<16x1xf32> to vector<16x32xf32>
    %119 = arith.mulf %109, %118 : vector<16x32xf32>
    %c4 = arith.constant 4 : index
    %c0_56 = arith.constant 0 : index
    %120 = vector.load %arg6[%c4, %c0_56] : memref<9x32xf32, #tpu.memory_space<vmem>>, vector<1x32xf32>
    %121 = vector.broadcast %120 : vector<1x32xf32> to vector<16x32xf32>
    %122 = arith.mulf %119, %121 : vector<16x32xf32>
    %c5 = arith.constant 5 : index
    %c0_57 = arith.constant 0 : index
    %123 = vector.load %arg6[%c5, %c0_57] : memref<9x32xf32, #tpu.memory_space<vmem>>, vector<1x32xf32>
    %124 = vector.broadcast %123 : vector<1x32xf32> to vector<16x32xf32>
    %125 = arith.addf %122, %124 : vector<16x32xf32>
    %c2_58 = arith.constant 2 : index
    %c0_59 = arith.constant 0 : index
    %c0_60 = arith.constant 0 : index
    %126 = vector.load %arg4[%c2_58, %c0_59, %c0_60] : memref<3x32x32xf32, #tpu.memory_space<vmem>>, vector<1x32x32xf32>
    %127 = vector.shape_cast %126 : vector<1x32x32xf32> to vector<32x32xf32>
    %cst_61 = arith.constant dense<0.000000e+00> : vector<16x32xf32>
    %128 = tpu.matmul %125, %127, %cst_61 {dimension_numbers = #tpu.dot_dimension_numbers<[1], [0], [0], [1], [0, 0, 1, 1], [], []>} : vector<16x32xf32>, vector<32x32xf32>, vector<16x32xf32> -> vector<16x32xf32>
    %c6 = arith.constant 6 : index
    %c0_62 = arith.constant 0 : index
    %129 = vector.load %arg6[%c6, %c0_62] : memref<9x32xf32, #tpu.memory_space<vmem>>, vector<1x32xf32>
    %130 = vector.broadcast %129 : vector<1x32xf32> to vector<16x32xf32>
    %131 = arith.addf %128, %130 : vector<16x32xf32>
    %cst_63 = arith.constant 0.000000e+00 : f32
    %132 = vector.broadcast %cst_63 : f32 to vector<16x32xf32>
    %133 = arith.cmpf oge, %131, %132 : vector<16x32xf32>
    %cst_64 = arith.constant 0.00999999977 : f32
    %134 = vector.broadcast %cst_64 : f32 to vector<16x32xf32>
    %135 = arith.mulf %134, %131 : vector<16x32xf32>
    %136 = arith.select %133, %131, %135 : vector<16x32xi1>, vector<16x32xf32>
    %137 = arith.addf %136, %125 : vector<16x32xf32>
    %cst_65 = arith.constant dense<0.000000e+00> : vector<16xf32>
    %138 = vector.multi_reduction <add>, %137, %cst_65 [1] : vector<16x32xf32> to vector<16xf32>
    %139 = vector.shape_cast %138 : vector<16xf32> to vector<16x1xf32>
    %cst_66 = arith.constant 3.200000e+01 : f32
    %140 = vector.broadcast %cst_66 : f32 to vector<16x1xf32>
    %141 = arith.divf %139, %140 : vector<16x1xf32>
    %142 = vector.broadcast %141 : vector<16x1xf32> to vector<16x32xf32>
    %143 = arith.subf %137, %142 : vector<16x32xf32>
    %144 = arith.mulf %143, %143 : vector<16x32xf32>
    %cst_67 = arith.constant dense<0.000000e+00> : vector<16xf32>
    %145 = vector.multi_reduction <add>, %144, %cst_67 [1] : vector<16x32xf32> to vector<16xf32>
    %146 = vector.shape_cast %145 : vector<16xf32> to vector<16x1xf32>
    %cst_68 = arith.constant 3.200000e+01 : f32
    %147 = vector.broadcast %cst_68 : f32 to vector<16x1xf32>
    %148 = arith.divf %146, %147 : vector<16x1xf32>
    %cst_69 = arith.constant 9.99999974E-6 : f32
    %149 = vector.broadcast %cst_69 : f32 to vector<16x1xf32>
    %150 = arith.addf %148, %149 : vector<16x1xf32>
    %151 = math.rsqrt %150 : vector<16x1xf32>
    %152 = vector.broadcast %151 : vector<16x1xf32> to vector<16x32xf32>
    %153 = arith.mulf %143, %152 : vector<16x32xf32>
    %c7 = arith.constant 7 : index
    %c0_70 = arith.constant 0 : index
    %154 = vector.load %arg6[%c7, %c0_70] : memref<9x32xf32, #tpu.memory_space<vmem>>, vector<1x32xf32>
    %155 = vector.broadcast %154 : vector<1x32xf32> to vector<16x32xf32>
    %156 = arith.mulf %153, %155 : vector<16x32xf32>
    %c8_71 = arith.constant 8 : index
    %c0_72 = arith.constant 0 : index
    %157 = vector.load %arg6[%c8_71, %c0_72] : memref<9x32xf32, #tpu.memory_space<vmem>>, vector<1x32xf32>
    %158 = vector.broadcast %157 : vector<1x32xf32> to vector<16x32xf32>
    %159 = arith.addf %156, %158 : vector<16x32xf32>
    %c0_73 = arith.constant 0 : index
    %c0_74 = arith.constant 0 : index
    %c0_75 = arith.constant 0 : index
    %160 = vector.load %arg7[%c0_73, %c0_74, %c0_75] : memref<1x16x32xf32, #tpu.memory_space<vmem>>, vector<1x16x32xf32>
    %161 = vector.shape_cast %160 : vector<1x16x32xf32> to vector<16x32xf32>
    %162 = vector.shape_cast %159 : vector<16x32xf32> to vector<1x16x32xf32>
    tpu.vector_store %arg7[%c0_73, %c0_74, %c0_75], %162 {strides = array<i32>} : memref<1x16x32xf32, #tpu.memory_space<vmem>>, vector<1x16x32xf32>,
    return
  }
  func.func @transform_0(%arg0: i32) -> (i32, i32, i32) {
    %c0_i32 = arith.constant 0 : i32
    %c0_i32_0 = arith.constant 0 : i32
    %c0_i32_1 = arith.constant 0 : i32
    return %arg0, %c0_i32, %c0_i32_0 : i32, i32, i32
  }
  func.func @transform_1(%arg0: i32) -> (i32, i32, i32) {
    %c0_i32 = arith.constant 0 : i32
    %c0_i32_0 = arith.constant 0 : i32
    %c0_i32_1 = arith.constant 0 : i32
    return %arg0, %c0_i32, %c0_i32_0 : i32, i32, i32
  }
  func.func @transform_2(%arg0: i32) -> (i32, i32, i32) {
    %c0_i32 = arith.constant 0 : i32
    %c0_i32_0 = arith.constant 0 : i32
    %c0_i32_1 = arith.constant 0 : i32
    return %arg0, %c0_i32, %c0_i32_0 : i32, i32, i32
  }
  func.func @transform_3(%arg0: i32) -> (i32, i32, i32) {
    %c0_i32 = arith.constant 0 : i32
    %c0_i32_0 = arith.constant 0 : i32
    %c0_i32_1 = arith.constant 0 : i32
    %c0_i32_2 = arith.constant 0 : i32
    return %c0_i32, %c0_i32_0, %c0_i32_1 : i32, i32, i32
  }
  func.func @transform_4(%arg0: i32) -> (i32, i32, i32) {
    %c0_i32 = arith.constant 0 : i32
    %c0_i32_0 = arith.constant 0 : i32
    %c0_i32_1 = arith.constant 0 : i32
    %c0_i32_2 = arith.constant 0 : i32
    return %c0_i32, %c0_i32_0, %c0_i32_1 : i32, i32, i32
  }
  func.func @transform_5(%arg0: i32) -> (i32, i32) {
    %c0_i32 = arith.constant 0 : i32
    %c0_i32_0 = arith.constant 0 : i32
    %c0_i32_1 = arith.constant 0 : i32
    return %c0_i32, %c0_i32_0 : i32, i32
  }
  func.func @transform_6(%arg0: i32) -> (i32, i32, i32) {
    %c0_i32 = arith.constant 0 : i32
    %c0_i32_0 = arith.constant 0 : i32
    %c0_i32_1 = arith.constant 0 : i32
    return %arg0, %c0_i32, %c0_i32_0 : i32, i32, i32
  }
}

module attributes {stable_mosaic.version = 11 : i64} {
  func.func @kernel(%arg0: i32, %arg1: memref<1x16x32xf32, #tpu.memory_space<vmem>>, %arg2: memref<1x8x16xf32, #tpu.memory_space<vmem>>, %arg3: memref<1x1x8xf32, #tpu.memory_space<vmem>>, %arg4: memref<3x32x32xf32, #tpu.memory_space<vmem>>, %arg5: memref<2x16x32xf32, #tpu.memory_space<vmem>>, %arg6: memref<9x32xf32, #tpu.memory_space<vmem>>, %arg7: memref<1x16x32xf32, #tpu.memory_space<vmem>>, %arg8: memref<16x32xf32, #tpu.memory_space<vmem>>) attributes {dimension_semantics = [#tpu.dimension_semantics<parallel>], iteration_bounds = array<i64: 2>, scalar_prefetch = 0 : i64, scratch_operands = 1 : i64, tpu.core_type = #tpu.core_type<tc>, window_params = [{transform_indices = @transform_0, window_bounds = array<i64: 1, 16, 32>}, {transform_indices = @transform_1, window_bounds = array<i64: 1, 8, 16>}, {transform_indices = @transform_2, window_bounds = array<i64: 1, 1, 8>}, {pipeline_mode = #tpu.pipeline_mode<synchronous>, transform_indices = @transform_3, window_bounds = array<i64: 3, 32, 32>}, {pipeline_mode = #tpu.pipeline_mode<synchronous>, transform_indices = @transform_4, window_bounds = array<i64: 2, 16, 32>}, {pipeline_mode = #tpu.pipeline_mode<synchronous>, transform_indices = @transform_5, window_bounds = array<i64: 9, 32>}, {transform_indices = @transform_6, window_bounds = array<i64: 1, 16, 32>}]} {
    %c0 = arith.constant 0 : index
    %c0_0 = arith.constant 0 : index
    %c0_1 = arith.constant 0 : index
    %0 = vector.load %arg1[%c0, %c0_0, %c0_1] : memref<1x16x32xf32, #tpu.memory_space<vmem>>, vector<1x16x32xf32>
    %1 = vector.shape_cast %0 : vector<1x16x32xf32> to vector<16x32xf32>
    %c0_2 = arith.constant 0 : index
    %c0_3 = arith.constant 0 : index
    %c0_4 = arith.constant 0 : index
    %2 = vector.load %arg2[%c0_2, %c0_3, %c0_4] : memref<1x8x16xf32, #tpu.memory_space<vmem>>, vector<1x8x16xf32>
    %3 = vector.shape_cast %2 : vector<1x8x16xf32> to vector<8x16xf32>
    %c0_5 = arith.constant 0 : index
    %c0_6 = arith.constant 0 : index
    %c0_7 = arith.constant 0 : index
    %4 = vector.load %arg3[%c0_5, %c0_6, %c0_7] : memref<1x1x8xf32, #tpu.memory_space<vmem>>, vector<1x1x8xf32>
    %5 = vector.shape_cast %4 : vector<1x1x8xf32> to vector<1x8xf32>
    %c0_8 = arith.constant 0 : index
    %c0_9 = arith.constant 0 : index
    %c0_10 = arith.constant 0 : index
    %6 = vector.load %arg4[%c0_8, %c0_9, %c0_10] : memref<3x32x32xf32, #tpu.memory_space<vmem>>, vector<1x32x32xf32>
    %7 = vector.shape_cast %6 : vector<1x32x32xf32> to vector<32x32xf32>
    %cst = arith.constant dense<0.000000e+00> : vector<16x32xf32>
    %8 = tpu.matmul %1, %7, %cst {dimension_numbers = #tpu.dot_dimension_numbers<[1], [0], [0], [1], [0, 0, 1, 1], [], []>} : vector<16x32xf32>, vector<32x32xf32>, vector<16x32xf32> -> vector<16x32xf32>
    %c0_11 = arith.constant 0 : index
    %c0_12 = arith.constant 0 : index
    %9 = vector.load %arg6[%c0_11, %c0_12] : memref<9x32xf32, #tpu.memory_space<vmem>>, vector<1x32xf32>
    %10 = vector.broadcast %9 : vector<1x32xf32> to vector<16x32xf32>
    %11 = arith.addf %8, %10 : vector<16x32xf32>
    %c0_13 = arith.constant 0 : index
    %c0_14 = arith.constant 0 : index
    %c0_15 = arith.constant 0 : index
    %12 = vector.load %arg5[%c0_13, %c0_14, %c0_15] : memref<2x16x32xf32, #tpu.memory_space<vmem>>, vector<1x16x32xf32>
    %13 = vector.shape_cast %12 : vector<1x16x32xf32> to vector<16x32xf32>
    %cst_16 = arith.constant dense<0.000000e+00> : vector<8x32xf32>
    %14 = tpu.matmul %3, %13, %cst_16 {dimension_numbers = #tpu.dot_dimension_numbers<[1], [0], [0], [1], [0, 0, 1, 1], [], []>} : vector<8x16xf32>, vector<16x32xf32>, vector<8x32xf32> -> vector<8x32xf32>
    %c1 = arith.constant 1 : index
    %c0_17 = arith.constant 0 : index
    %15 = vector.load %arg6[%c1, %c0_17] : memref<9x32xf32, #tpu.memory_space<vmem>>, vector<1x32xf32>
    %16 = vector.broadcast %15 : vector<1x32xf32> to vector<8x32xf32>
    %17 = arith.addf %14, %16 : vector<8x32xf32>
    %c1_18 = arith.constant 1 : index
    %c0_19 = arith.constant 0 : index
    %c0_20 = arith.constant 0 : index
    %18 = vector.load %arg5[%c1_18, %c0_19, %c0_20] : memref<2x16x32xf32, #tpu.memory_space<vmem>>, vector<1x16x32xf32>
    %19 = vector.shape_cast %18 : vector<1x16x32xf32> to vector<16x32xf32>
    %cst_21 = arith.constant dense<0.000000e+00> : vector<8x32xf32>
    %20 = tpu.matmul %3, %19, %cst_21 {dimension_numbers = #tpu.dot_dimension_numbers<[1], [0], [0], [1], [0, 0, 1, 1], [], []>} : vector<8x16xf32>, vector<16x32xf32>, vector<8x32xf32> -> vector<8x32xf32>
    %c2 = arith.constant 2 : index
    %c0_22 = arith.constant 0 : index
    %21 = vector.load %arg6[%c2, %c0_22] : memref<9x32xf32, #tpu.memory_space<vmem>>, vector<1x32xf32>
    %22 = vector.broadcast %21 : vector<1x32xf32> to vector<8x32xf32>
    %23 = arith.addf %20, %22 : vector<8x32xf32>
    %24 = vector.extract_strided_slice %11 {offsets = [0, 0], sizes = [16, 8], strides = [1, 1]} : vector<16x32xf32> to vector<16x8xf32>
    %25 = vector.extract_strided_slice %17 {offsets = [0, 0], sizes = [8, 8], strides = [1, 1]} : vector<8x32xf32> to vector<8x8xf32>
    %cst_23 = arith.constant dense<0.000000e+00> : vector<16x8xf32>
    %26 = tpu.matmul %24, %25, %cst_23 {dimension_numbers = #tpu.dot_dimension_numbers<[1], [1], [0], [0], [0, 0, 1, 0], [], []>} : vector<16x8xf32>, vector<8x8xf32>, vector<16x8xf32> -> vector<16x8xf32>
    %27 = vector.broadcast %5 : vector<1x8xf32> to vector<16x8xf32>
    %28 = arith.addf %26, %27 : vector<16x8xf32>
    %cst_24 = arith.constant dense<0xFF800000> : vector<16xf32>
    %29 = vector.multi_reduction <maximumf>, %28, %cst_24 [1] : vector<16x8xf32> to vector<16xf32>
    %30 = vector.shape_cast %29 : vector<16xf32> to vector<16x1xf32>
    %31 = vector.broadcast %30 : vector<16x1xf32> to vector<16x8xf32>
    %32 = arith.subf %28, %31 : vector<16x8xf32>
    %33 = math.exp %32 : vector<16x8xf32>
    %cst_25 = arith.constant dense<0.000000e+00> : vector<16xf32>
    %34 = vector.multi_reduction <add>, %33, %cst_25 [1] : vector<16x8xf32> to vector<16xf32>
    %35 = vector.shape_cast %34 : vector<16xf32> to vector<16x1xf32>
    %36 = tpu.reciprocal %35 : vector<16x1xf32> -> vector<16x1xf32>
    %37 = vector.broadcast %36 : vector<16x1xf32> to vector<16x8xf32>
    %38 = arith.mulf %33, %37 : vector<16x8xf32>
    %39 = vector.extract_strided_slice %23 {offsets = [0, 0], sizes = [8, 8], strides = [1, 1]} : vector<8x32xf32> to vector<8x8xf32>
    %cst_26 = arith.constant dense<0.000000e+00> : vector<16x8xf32>
    %40 = tpu.matmul %38, %39, %cst_26 {dimension_numbers = #tpu.dot_dimension_numbers<[1], [0], [0], [1], [0, 0, 1, 1], [], []>} : vector<16x8xf32>, vector<8x8xf32>, vector<16x8xf32> -> vector<16x8xf32>
    %c0_27 = arith.constant 0 : index
    %c0_28 = arith.constant 0 : index
    %41 = vector.load %arg8[%c0_27, %c0_28] : memref<16x32xf32, #tpu.memory_space<vmem>>, vector<16x8xf32>
    tpu.vector_store %arg8[%c0_27, %c0_28], %40 {strides = array<i32>} : memref<16x32xf32, #tpu.memory_space<vmem>>, vector<16x8xf32>,
    %42 = vector.extract_strided_slice %11 {offsets = [0, 8], sizes = [16, 8], strides = [1, 1]} : vector<16x32xf32> to vector<16x8xf32>
    %43 = vector.extract_strided_slice %17 {offsets = [0, 8], sizes = [8, 8], strides = [1, 1]} : vector<8x32xf32> to vector<8x8xf32>
    %cst_29 = arith.constant dense<0.000000e+00> : vector<16x8xf32>
    %44 = tpu.matmul %42, %43, %cst_29 {dimension_numbers = #tpu.dot_dimension_numbers<[1], [1], [0], [0], [0, 0, 1, 0], [], []>} : vector<16x8xf32>, vector<8x8xf32>, vector<16x8xf32> -> vector<16x8xf32>
    %45 = vector.broadcast %5 : vector<1x8xf32> to vector<16x8xf32>
    %46 = arith.addf %44, %45 : vector<16x8xf32>
    %cst_30 = arith.constant dense<0xFF800000> : vector<16xf32>
    %47 = vector.multi_reduction <maximumf>, %46, %cst_30 [1] : vector<16x8xf32> to vector<16xf32>
    %48 = vector.shape_cast %47 : vector<16xf32> to vector<16x1xf32>
    %49 = vector.broadcast %48 : vector<16x1xf32> to vector<16x8xf32>
    %50 = arith.subf %46, %49 : vector<16x8xf32>
    %51 = math.exp %50 : vector<16x8xf32>
    %cst_31 = arith.constant dense<0.000000e+00> : vector<16xf32>
    %52 = vector.multi_reduction <add>, %51, %cst_31 [1] : vector<16x8xf32> to vector<16xf32>
    %53 = vector.shape_cast %52 : vector<16xf32> to vector<16x1xf32>
    %54 = tpu.reciprocal %53 : vector<16x1xf32> -> vector<16x1xf32>
    %55 = vector.broadcast %54 : vector<16x1xf32> to vector<16x8xf32>
    %56 = arith.mulf %51, %55 : vector<16x8xf32>
    %57 = vector.extract_strided_slice %23 {offsets = [0, 8], sizes = [8, 8], strides = [1, 1]} : vector<8x32xf32> to vector<8x8xf32>
    %cst_32 = arith.constant dense<0.000000e+00> : vector<16x8xf32>
    %58 = tpu.matmul %56, %57, %cst_32 {dimension_numbers = #tpu.dot_dimension_numbers<[1], [0], [0], [1], [0, 0, 1, 1], [], []>} : vector<16x8xf32>, vector<8x8xf32>, vector<16x8xf32> -> vector<16x8xf32>
    %c0_33 = arith.constant 0 : index
    %c8 = arith.constant 8 : index
    %59 = vector.load %arg8[%c0_33, %c8] : memref<16x32xf32, #tpu.memory_space<vmem>>, vector<16x8xf32>
    tpu.vector_store %arg8[%c0_33, %c8], %58 {strides = array<i32>} : memref<16x32xf32, #tpu.memory_space<vmem>>, vector<16x8xf32>,
    %60 = vector.extract_strided_slice %11 {offsets = [0, 16], sizes = [16, 8], strides = [1, 1]} : vector<16x32xf32> to vector<16x8xf32>
    %61 = vector.extract_strided_slice %17 {offsets = [0, 16], sizes = [8, 8], strides = [1, 1]} : vector<8x32xf32> to vector<8x8xf32>
    %cst_34 = arith.constant dense<0.000000e+00> : vector<16x8xf32>
    %62 = tpu.matmul %60, %61, %cst_34 {dimension_numbers = #tpu.dot_dimension_numbers<[1], [1], [0], [0], [0, 0, 1, 0], [], []>} : vector<16x8xf32>, vector<8x8xf32>, vector<16x8xf32> -> vector<16x8xf32>
    %63 = vector.broadcast %5 : vector<1x8xf32> to vector<16x8xf32>
    %64 = arith.addf %62, %63 : vector<16x8xf32>
    %cst_35 = arith.constant dense<0xFF800000> : vector<16xf32>
    %65 = vector.multi_reduction <maximumf>, %64, %cst_35 [1] : vector<16x8xf32> to vector<16xf32>
    %66 = vector.shape_cast %65 : vector<16xf32> to vector<16x1xf32>
    %67 = vector.broadcast %66 : vector<16x1xf32> to vector<16x8xf32>
    %68 = arith.subf %64, %67 : vector<16x8xf32>
    %69 = math.exp %68 : vector<16x8xf32>
    %cst_36 = arith.constant dense<0.000000e+00> : vector<16xf32>
    %70 = vector.multi_reduction <add>, %69, %cst_36 [1] : vector<16x8xf32> to vector<16xf32>
    %71 = vector.shape_cast %70 : vector<16xf32> to vector<16x1xf32>
    %72 = tpu.reciprocal %71 : vector<16x1xf32> -> vector<16x1xf32>
    %73 = vector.broadcast %72 : vector<16x1xf32> to vector<16x8xf32>
    %74 = arith.mulf %69, %73 : vector<16x8xf32>
    %75 = vector.extract_strided_slice %23 {offsets = [0, 16], sizes = [8, 8], strides = [1, 1]} : vector<8x32xf32> to vector<8x8xf32>
    %cst_37 = arith.constant dense<0.000000e+00> : vector<16x8xf32>
    %76 = tpu.matmul %74, %75, %cst_37 {dimension_numbers = #tpu.dot_dimension_numbers<[1], [0], [0], [1], [0, 0, 1, 1], [], []>} : vector<16x8xf32>, vector<8x8xf32>, vector<16x8xf32> -> vector<16x8xf32>
    %c0_38 = arith.constant 0 : index
    %c16 = arith.constant 16 : index
    %77 = vector.load %arg8[%c0_38, %c16] : memref<16x32xf32, #tpu.memory_space<vmem>>, vector<16x8xf32>
    tpu.vector_store %arg8[%c0_38, %c16], %76 {strides = array<i32>} : memref<16x32xf32, #tpu.memory_space<vmem>>, vector<16x8xf32>,
    %78 = vector.extract_strided_slice %11 {offsets = [0, 24], sizes = [16, 8], strides = [1, 1]} : vector<16x32xf32> to vector<16x8xf32>
    %79 = vector.extract_strided_slice %17 {offsets = [0, 24], sizes = [8, 8], strides = [1, 1]} : vector<8x32xf32> to vector<8x8xf32>
    %cst_39 = arith.constant dense<0.000000e+00> : vector<16x8xf32>
    %80 = tpu.matmul %78, %79, %cst_39 {dimension_numbers = #tpu.dot_dimension_numbers<[1], [1], [0], [0], [0, 0, 1, 0], [], []>} : vector<16x8xf32>, vector<8x8xf32>, vector<16x8xf32> -> vector<16x8xf32>
    %81 = vector.broadcast %5 : vector<1x8xf32> to vector<16x8xf32>
    %82 = arith.addf %80, %81 : vector<16x8xf32>
    %cst_40 = arith.constant dense<0xFF800000> : vector<16xf32>
    %83 = vector.multi_reduction <maximumf>, %82, %cst_40 [1] : vector<16x8xf32> to vector<16xf32>
    %84 = vector.shape_cast %83 : vector<16xf32> to vector<16x1xf32>
    %85 = vector.broadcast %84 : vector<16x1xf32> to vector<16x8xf32>
    %86 = arith.subf %82, %85 : vector<16x8xf32>
    %87 = math.exp %86 : vector<16x8xf32>
    %cst_41 = arith.constant dense<0.000000e+00> : vector<16xf32>
    %88 = vector.multi_reduction <add>, %87, %cst_41 [1] : vector<16x8xf32> to vector<16xf32>
    %89 = vector.shape_cast %88 : vector<16xf32> to vector<16x1xf32>
    %90 = tpu.reciprocal %89 : vector<16x1xf32> -> vector<16x1xf32>
    %91 = vector.broadcast %90 : vector<16x1xf32> to vector<16x8xf32>
    %92 = arith.mulf %87, %91 : vector<16x8xf32>
    %93 = vector.extract_strided_slice %23 {offsets = [0, 24], sizes = [8, 8], strides = [1, 1]} : vector<8x32xf32> to vector<8x8xf32>
    %cst_42 = arith.constant dense<0.000000e+00> : vector<16x8xf32>
    %94 = tpu.matmul %92, %93, %cst_42 {dimension_numbers = #tpu.dot_dimension_numbers<[1], [0], [0], [1], [0, 0, 1, 1], [], []>} : vector<16x8xf32>, vector<8x8xf32>, vector<16x8xf32> -> vector<16x8xf32>
    %c0_43 = arith.constant 0 : index
    %c24 = arith.constant 24 : index
    %95 = vector.load %arg8[%c0_43, %c24] : memref<16x32xf32, #tpu.memory_space<vmem>>, vector<16x8xf32>
    tpu.vector_store %arg8[%c0_43, %c24], %94 {strides = array<i32>} : memref<16x32xf32, #tpu.memory_space<vmem>>, vector<16x8xf32>,
    %c0_44 = arith.constant 0 : index
    %c0_45 = arith.constant 0 : index
    %96 = vector.load %arg8[%c0_44, %c0_45] : memref<16x32xf32, #tpu.memory_space<vmem>>, vector<16x32xf32>
    %c1_46 = arith.constant 1 : index
    %c0_47 = arith.constant 0 : index
    %c0_48 = arith.constant 0 : index
    %97 = vector.load %arg4[%c1_46, %c0_47, %c0_48] : memref<3x32x32xf32, #tpu.memory_space<vmem>>, vector<1x32x32xf32>
    %98 = vector.shape_cast %97 : vector<1x32x32xf32> to vector<32x32xf32>
    %cst_49 = arith.constant dense<0.000000e+00> : vector<16x32xf32>
    %99 = tpu.matmul %96, %98, %cst_49 {dimension_numbers = #tpu.dot_dimension_numbers<[1], [0], [0], [1], [0, 0, 1, 1], [], []>} : vector<16x32xf32>, vector<32x32xf32>, vector<16x32xf32> -> vector<16x32xf32>
    %c3 = arith.constant 3 : index
    %c0_50 = arith.constant 0 : index
    %100 = vector.load %arg6[%c3, %c0_50] : memref<9x32xf32, #tpu.memory_space<vmem>>, vector<1x32xf32>
    %101 = vector.broadcast %100 : vector<1x32xf32> to vector<16x32xf32>
    %102 = arith.addf %99, %101 : vector<16x32xf32>
    %103 = arith.addf %102, %1 : vector<16x32xf32>
    %cst_51 = arith.constant dense<0.000000e+00> : vector<16xf32>
    %104 = vector.multi_reduction <add>, %103, %cst_51 [1] : vector<16x32xf32> to vector<16xf32>
    %105 = vector.shape_cast %104 : vector<16xf32> to vector<16x1xf32>
    %cst_52 = arith.constant 3.200000e+01 : f32
    %106 = vector.broadcast %cst_52 : f32 to vector<16x1xf32>
    %107 = arith.divf %105, %106 : vector<16x1xf32>
    %108 = vector.broadcast %107 : vector<16x1xf32> to vector<16x32xf32>
    %109 = arith.subf %103, %108 : vector<16x32xf32>
    %110 = arith.mulf %109, %109 : vector<16x32xf32>
    %cst_53 = arith.constant dense<0.000000e+00> : vector<16xf32>
    %111 = vector.multi_reduction <add>, %110, %cst_53 [1] : vector<16x32xf32> to vector<16xf32>
    %112 = vector.shape_cast %111 : vector<16xf32> to vector<16x1xf32>
    %cst_54 = arith.constant 3.200000e+01 : f32
    %113 = vector.broadcast %cst_54 : f32 to vector<16x1xf32>
    %114 = arith.divf %112, %113 : vector<16x1xf32>
    %cst_55 = arith.constant 9.99999974E-6 : f32
    %115 = vector.broadcast %cst_55 : f32 to vector<16x1xf32>
    %116 = arith.addf %114, %115 : vector<16x1xf32>
    %117 = math.rsqrt %116 : vector<16x1xf32>
    %118 = vector.broadcast %117 : vector<16x1xf32> to vector<16x32xf32>
    %119 = arith.mulf %109, %118 : vector<16x32xf32>
    %c4 = arith.constant 4 : index
    %c0_56 = arith.constant 0 : index
    %120 = vector.load %arg6[%c4, %c0_56] : memref<9x32xf32, #tpu.memory_space<vmem>>, vector<1x32xf32>
    %121 = vector.broadcast %120 : vector<1x32xf32> to vector<16x32xf32>
    %122 = arith.mulf %119, %121 : vector<16x32xf32>
    %c5 = arith.constant 5 : index
    %c0_57 = arith.constant 0 : index
    %123 = vector.load %arg6[%c5, %c0_57] : memref<9x32xf32, #tpu.memory_space<vmem>>, vector<1x32xf32>
    %124 = vector.broadcast %123 : vector<1x32xf32> to vector<16x32xf32>
    %125 = arith.addf %122, %124 : vector<16x32xf32>
    %c2_58 = arith.constant 2 : index
    %c0_59 = arith.constant 0 : index
    %c0_60 = arith.constant 0 : index
    %126 = vector.load %arg4[%c2_58, %c0_59, %c0_60] : memref<3x32x32xf32, #tpu.memory_space<vmem>>, vector<1x32x32xf32>
    %127 = vector.shape_cast %126 : vector<1x32x32xf32> to vector<32x32xf32>
    %cst_61 = arith.constant dense<0.000000e+00> : vector<16x32xf32>
    %128 = tpu.matmul %125, %127, %cst_61 {dimension_numbers = #tpu.dot_dimension_numbers<[1], [0], [0], [1], [0, 0, 1, 1], [], []>} : vector<16x32xf32>, vector<32x32xf32>, vector<16x32xf32> -> vector<16x32xf32>
    %c6 = arith.constant 6 : index
    %c0_62 = arith.constant 0 : index
    %129 = vector.load %arg6[%c6, %c0_62] : memref<9x32xf32, #tpu.memory_space<vmem>>, vector<1x32xf32>
    %130 = vector.broadcast %129 : vector<1x32xf32> to vector<16x32xf32>
    %131 = arith.addf %128, %130 : vector<16x32xf32>
    %cst_63 = arith.constant 0.000000e+00 : f32
    %132 = vector.broadcast %cst_63 : f32 to vector<16x32xf32>
    %133 = arith.cmpf oge, %131, %132 : vector<16x32xf32>
    %cst_64 = arith.constant 0.00999999977 : f32
    %134 = vector.broadcast %cst_64 : f32 to vector<16x32xf32>
    %135 = arith.mulf %134, %131 : vector<16x32xf32>
    %136 = arith.select %133, %131, %135 : vector<16x32xi1>, vector<16x32xf32>
    %137 = arith.addf %136, %125 : vector<16x32xf32>
    %cst_65 = arith.constant dense<0.000000e+00> : vector<16xf32>
    %138 = vector.multi_reduction <add>, %137, %cst_65 [1] : vector<16x32xf32> to vector<16xf32>
    %139 = vector.shape_cast %138 : vector<16xf32> to vector<16x1xf32>
    %cst_66 = arith.constant 3.200000e+01 : f32
    %140 = vector.broadcast %cst_66 : f32 to vector<16x1xf32>
    %141 = arith.divf %139, %140 : vector<16x1xf32>
    %142 = vector.broadcast %141 : vector<16x1xf32> to vector<16x32xf32>
    %143 = arith.subf %137, %142 : vector<16x32xf32>
    %144 = arith.mulf %143, %143 : vector<16x32xf32>
    %cst_67 = arith.constant dense<0.000000e+00> : vector<16xf32>
    %145 = vector.multi_reduction <add>, %144, %cst_67 [1] : vector<16x32xf32> to vector<16xf32>
    %146 = vector.shape_cast %145 : vector<16xf32> to vector<16x1xf32>
    %cst_68 = arith.constant 3.200000e+01 : f32
    %147 = vector.broadcast %cst_68 : f32 to vector<16x1xf32>
    %148 = arith.divf %146, %147 : vector<16x1xf32>
    %cst_69 = arith.constant 9.99999974E-6 : f32
    %149 = vector.broadcast %cst_69 : f32 to vector<16x1xf32>
    %150 = arith.addf %148, %149 : vector<16x1xf32>
    %151 = math.rsqrt %150 : vector<16x1xf32>
    %152 = vector.broadcast %151 : vector<16x1xf32> to vector<16x32xf32>
    %153 = arith.mulf %143, %152 : vector<16x32xf32>
    %c7 = arith.constant 7 : index
    %c0_70 = arith.constant 0 : index
    %154 = vector.load %arg6[%c7, %c0_70] : memref<9x32xf32, #tpu.memory_space<vmem>>, vector<1x32xf32>
    %155 = vector.broadcast %154 : vector<1x32xf32> to vector<16x32xf32>
    %156 = arith.mulf %153, %155 : vector<16x32xf32>
    %c8_71 = arith.constant 8 : index
    %c0_72 = arith.constant 0 : index
    %157 = vector.load %arg6[%c8_71, %c0_72] : memref<9x32xf32, #tpu.memory_space<vmem>>, vector<1x32xf32>
    %158 = vector.broadcast %157 : vector<1x32xf32> to vector<16x32xf32>
    %159 = arith.addf %156, %158 : vector<16x32xf32>
    %c0_73 = arith.constant 0 : index
    %c0_74 = arith.constant 0 : index
    %c0_75 = arith.constant 0 : index
    %160 = vector.load %arg7[%c0_73, %c0_74, %c0_75] : memref<1x16x32xf32, #tpu.memory_space<vmem>>, vector<1x16x32xf32>
    %161 = vector.shape_cast %160 : vector<1x16x32xf32> to vector<16x32xf32>
    %162 = vector.shape_cast %159 : vector<16x32xf32> to vector<1x16x32xf32>
    tpu.vector_store %arg7[%c0_73, %c0_74, %c0_75], %162 {strides = array<i32>} : memref<1x16x32xf32, #tpu.memory_space<vmem>>, vector<1x16x32xf32>,
    return
  }
  func.func @transform_0(%arg0: i32) -> (i32, i32, i32) {
    %c0_i32 = arith.constant 0 : i32
    %c0_i32_0 = arith.constant 0 : i32
    %c0_i32_1 = arith.constant 0 : i32
    return %arg0, %c0_i32, %c0_i32_0 : i32, i32, i32
  }
  func.func @transform_1(%arg0: i32) -> (i32, i32, i32) {
    %c0_i32 = arith.constant 0 : i32
    %c0_i32_0 = arith.constant 0 : i32
    %c0_i32_1 = arith.constant 0 : i32
    return %arg0, %c0_i32, %c0_i32_0 : i32, i32, i32
  }
  func.func @transform_2(%arg0: i32) -> (i32, i32, i32) {
    %c0_i32 = arith.constant 0 : i32
    %c0_i32_0 = arith.constant 0 : i32
    %c0_i32_1 = arith.constant 0 : i32
    return %arg0, %c0_i32, %c0_i32_0 : i32, i32, i32
  }
  func.func @transform_3(%arg0: i32) -> (i32, i32, i32) {
    %c0_i32 = arith.constant 0 : i32
    %c0_i32_0 = arith.constant 0 : i32
    %c0_i32_1 = arith.constant 0 : i32
    %c0_i32_2 = arith.constant 0 : i32
    return %c0_i32, %c0_i32_0, %c0_i32_1 : i32, i32, i32
  }
  func.func @transform_4(%arg0: i32) -> (i32, i32, i32) {
    %c0_i32 = arith.constant 0 : i32
    %c0_i32_0 = arith.constant 0 : i32
    %c0_i32_1 = arith.constant 0 : i32
    %c0_i32_2 = arith.constant 0 : i32
    return %c0_i32, %c0_i32_0, %c0_i32_1 : i32, i32, i32
  }
  func.func @transform_5(%arg0: i32) -> (i32, i32) {
    %c0_i32 = arith.constant 0 : i32
    %c0_i32_0 = arith.constant 0 : i32
    %c0_i32_1 = arith.constant 0 : i32
    return %c0_i32, %c0_i32_0 : i32, i32
  }
  func.func @transform_6(%arg0: i32) -> (i32, i32, i32) {
    %c0_i32 = arith.constant 0 : i32
    %c0_i32_0 = arith.constant 0 : i32
    %c0_i32_1 = arith.constant 0 : i32
    return %arg0, %c0_i32, %c0_i32_0 : i32, i32, i32
  }
}

</mosaic_0001>

<bundles_post_ra>
// kernel: cross_attention_graph_block_padded.1
= control target key start
LH: loop header
LB: loop body
LE: loop exit
PB: predicated region body
PF: predicated region fallthrough
CT: control target
= control target key end

     0   :  { %11 = vsyncpa [#allocation4], 0  ;;  %s1789_s0 = inlined_call_operand.vmem [shape: f32[2,16,32], index: 0, kind: input, shape index: {}]   ;;  %s1790_s1 = inlined_call_operand.vmem [shape: f32[2,8,16], index: 1, kind: input, shape index: {}]   ;;  %s1791_s2 = inlined_call_operand.vmem [shape: f32[2,1,8], index: 2, kind: input, shape index: {}]   ;;  %s1792_s3 = inlined_call_operand.vmem [shape: f32[3,32,32], index: 3, kind: input, shape index: {}]   ;;  %s1793_s4 = inlined_call_operand.vmem [shape: f32[2,16,32], index: 4, kind: input, shape index: {}]   ;;  %s1794_s5 = inlined_call_operand.vmem [shape: f32[9,32], index: 5, kind: input, shape index: {}]   ;;  %s1795_s6 = inlined_call_operand.hbm [shape: f32[2,16,32], index: 6, kind: output, shape index: {}]  }
   0x1   :  { %13 = vsyncpa [#allocation4 + $0x1], 0  ;;  %s1423_s21 = smov 0   ;;  %s1425_s22 = smov 0  }
   0x2   :  { %s1427_s23 = smov 0   ;;  %s1429_s24 = smov 0  }
   0x3 LB: > { %s1444_s25 = sadd.s32 4294967295, %s1378_s24   ;;  %s1164_s26 = sadd.s32 4294967294, %s1378_s24   ;;  %s1378_s24 = sphi %s1429_s24, %s1801_s24   ;;  %s1374_s23 = sphi %s1427_s23, %s1800_s23   ;;  %s1370_s22 = sphi %s1425_s22, %s1799_s22   ;;  %s1366_s21 = sphi %s1423_s21, %s1798_s21  }
   0x4   : > { %s1448_s27 = sadd.s32 1, %s1378_s24   ;;  %s167_s28 = sadd.s32 1, %s1374_s23 }
   0x5   : > { %s164_s29 = ssub.s32 %s1378_s24, %s1448_s27  ;;  %p177_p0 = scmp.ne.s32.totalorder %s1374_s23, %s1370_s22 }
   0x6   : > { %p165_p1 = scmp.eq.s32.totalorder %s164_s29, 0  ;;  %p178_p2 = scmp.eq.s32.totalorder %s1444_s25, 1 }
   0x7   : > { %p183_p3 = scmp.ne.s32.totalorder %s1370_s22, %s1366_s21  ;;  %p184_p4 = scmp.eq.s32.totalorder %s1164_s26, 1 }
   0x8   : > { %s1459_s30 = scalar_select %p165_p1, %s1374_s23, %s167_s28  }
   0x9   : > { %p1461_p5 = por %p178_p2, %p177_p0  ;;  %p1465_p6 = por %p184_p4, %p183_p3 }
   0xa   : > { %p1167_p7 = scmp.ge.s32.totalorder %s1378_s24, 1  ;;  %p232_p8 = scmp.lt.s32.totalorder %s1378_s24, 3 }
   0xc   : > { %p233_p9 = pnand %p1167_p7, %p232_p8 }
   0xd   : > { %p269_p10 = scmp.lt.s32.totalorder (!%p233_p9), %s1444_s25, 1  ;;  %s1380_s29 = smov (!%p233_p9), 104  }
   0xe   : > { %236 = sbr.rel (%p233_p9) target bundleno = 1802 (0x70a), region = 44  ;;  %s1381_s9 = smov (!%p233_p9), 120  }
   0xf   : > { %s1382_s11 = smov (!%p233_p9), 112   ;;  %s1385_s26 = smov (!%p233_p9), 24  }
  0x10   : > { %s266_s18 = sand.u32 (!%p233_p9), 1, %s1370_s22  }
  0x13   : > { %v288_v0 = vld [vmem:[%s1792_s3 + $0x18] sm:$0xff]  ;;  %v287_v1 = vld [vmem:[%s1792_s3 + $0x10] sm:$0xff]  ;;  %v322_v2 = vld [vmem:[%s1793_s4 + $0x8] sm:$0xff]  ;;  %s1488_s19 = scalar_select %p269_p10, %s1444_s25, 1  ;;  %vm325_vm0 = vcmask 130048   ;;  %vm291_vm1 = vcmask 261120  }
  0x14   : > { %310 = vmatpush.msra.mxu0 %v288_v0  ;;  %343 = vmatpush.msra.mxu2 %v322_v2  ;;  %v321_v3 = vld [vmem:[%s1793_s4] sm:$0xff]  ;;  %v286_v4 = vld [vmem:[%s1792_s3 + $0x8] sm:$0xff]  ;;  %vm377_vm2 = vcmask 64512   ;;  %v1176_v17 = vld [vmem:[%s1793_s4 + $0x18] sm:$0xff] }
  0x15   : > { %v285_v5 = vld [vmem:[%s1792_s3] sm:$0xff]  ;;  %s1171_s28 = sshll.u32 %s1488_s19, 3  ;;  %s280_s10 = scalar_lea.vmem %s1791_s2, %s1488_s19  ;;  %v1175_v18 = vld [vmem:[%s1793_s4 + $0x10] sm:$0xff] }
  0x16   : > { %311 = vmatpush.msra.mxu0 %v287_v1  ;;  %344 = vmatpush.msra.mxu2 %v321_v3  ;;  %s277_s13 = scalar_lea.vmem %s1790_s1, %s1171_s28  ;;  %s1215_s14 = sshll.u32 %s1488_s19, 4  ;;  %v1265_v9 = vld [vmem:[%s1794_s5] ss:$0 sm:$0xff]  ;;  %v1266_v12 = vld [vmem:[%s1794_s5 + $0x1] ss:$0 sm:$0xff] }
  0x17   : > { %v283_v6 = vld [vmem:[%s277_s13] sm:$0xff]  ;;  %s273_s17 = scalar_lea.vmem %s1789_s0, %s1215_s14  ;;  %s1383_s19 = smov 8  }
  0x18   : > { %312 = vmatpush.msra.mxu0 %v286_v4  ;;  %1174 = vmatmul.msk.f32.vlgmr.msra.gmra.mxu2 %vm325_vm0, %v283_v6  ;;  %v1506_v7 = vld [vmem:[%s273_s17] sm:$0xff]  ;;  %v1510_v8 = vld [vmem:[%s273_s17 + $0x8] sm:$0xff]  ;;  %s1336_s28 = scalar_lea.hbm %s1795_s6, 32 }
  0x19   : > { %368 = vmatpush.msrb.mxu2 %v1176_v17  ;;  %v1264_v25 = vld [vmem:[%s280_s10] ss:$0 sm:$0xff]  ;;  %v1267_v32 = vld [vmem:[%s1794_s5 + $0x2] ss:$0 sm:$0xff]  ;;  %s1384_s10 = smov 16  }
  0x1a   : > { %313 = vmatpush.msra.mxu0 %v285_v5 }
  0x1b   : > { %1172 = vmatmul.msk.f32.vlgmr.msra.gmra.mxu0 %vm291_vm1, %v1506_v7  ;;  %369 = vmatpush.msrb.mxu2 %v1175_v18 }
  0x20   : > { %1177 = vmatmul.msk.f32.vlgmr.msrb.gmra.mxu2 %vm325_vm0, %v283_v6 }
  0x23   : > { %1173 = vmatmul.msk.f32.gmra.mxu0 %vm291_vm1, %v1510_v8 }
  0x98   : > { %v315_v10 = vpop.f32.mrf.mxu0 }
  0x99   : > { %v316_v11 = vadd.f32 %v1265_v9, %v315_v10 }
  0x9b   : > { %742 = vrot.lane.b32.xlu2 %v316_v11, %s1380_s29  ;;  %v346_v13 = vpop.f32.mrf.mxu2 }
  0x9c   : > { %v347_v14 = vadd.f32 %v1266_v12, %v346_v13 }
  0x9e   : > { %493 = vrot.lane.b32.xlu0 %v347_v14, %s1381_s9  ;;  %1178 = vmatpush.xpose.msk.msra.mxu3 %vm377_vm2, %v347_v14 }
  0xa0   : > { %v318_v15 = vpop.f32.mrf.mxu0 }
  0xa1   : > { %v319_v16 = vadd.f32 %v1265_v9, %v318_v15  ;;  %1179 = vmatmul.msk.f32.vlgmr.msra.gmra.mxu3 %vm377_vm2, %v316_v11 }
  0xa3   : > { %491 = vrot.lane.b32.xlu1 %v319_v16, %s1381_s9  ;;  %620 = vrot.lane.b32.xlu2 %v347_v14, %s1382_s11  ;;  %v371_v33 = vpop.f32.mrf.mxu2 }
  0xa4   : > { %v1557_v34 = vadd.f32 %v1267_v32, %v371_v33 }
  0xa6   : > { %489 = vrot.lane.b32.xlu0 %v316_v11, %s1381_s9  ;;  %479 = vmatpush.msra.mxu1 %v1557_v34 }
  0xa9   : > { %1180 = vmatmul.msk.f32.gmra.mxu3 %vm377_vm2, %v319_v16 }
  0xab   : > { %746 = vrot.lane.b32.xlu1 %v347_v14, %s1380_s29  ;;  %618 = vrot.lane.b32.xlu2 %v319_v16, %s1382_s11 }
  0xae   : > { %744 = vrot.lane.b32.xlu0 %v319_v16, %s1380_s29 }
  0xb3   : > { %616 = vrot.lane.b32.xlu1 %v316_v11, %s1382_s11 }
  0xf5   : > { %v743_v19 = vpop.permute.xlu2 %742 }
  0xfd   : > { %v621_v20 = vpop.permute.xlu2 %620 }
  0xfe   : > { %1188 = vmatpush.xpose.msk.msrb.mxu0 %vm377_vm2, %v621_v20 }
 0x105   : > { %v619_v30 = vpop.permute.xlu2 %618 }
 0x110   : > { %v494_v21 = vpop.permute.xlu0 %493 }
 0x111   : > { %1183 = vmatpush.xpose.msk.msra.mxu2 %vm377_vm2, %v494_v21 }
 0x115   : > { %v492_v22 = vpop.permute.xlu1 %491 }
 0x118   : > { %v490_v23 = vpop.permute.xlu0 %489 }
 0x119   : > { %1184 = vmatmul.msk.f32.vlgmr.msra.gmra.mxu2 %vm377_vm2, %v490_v23 }
 0x11d   : > { %v747_v24 = vpop.permute.xlu1 %746 }
 0x11e   : > { %1193 = vmatpush.xpose.msk.msrb.mxu2 %vm377_vm2, %v747_v24 }
 0x120   : > { %v745_v31 = vpop.permute.xlu0 %744 }
 0x121   : > { %1185 = vmatmul.msk.f32.gmra.mxu2 %vm377_vm2, %v492_v22 }
 0x124   : > { %v404_v27 = vpop.f32.mrf.mxu3 }
 0x125   : > { %v617_v26 = vpop.permute.xlu1 %616  ;;  %v405_v28 = vadd.f32 %v1264_v25, %v404_v27 }
 0x126   : > { %1189 = vmatmul.msk.f32.vlgmr.msrb.gmra.mxu0 %vm377_vm2, %v617_v26 }
 0x127   : > { %v410_v29 = vsel %vm377_vm2, %v405_v28, -inf }
 0x128   : > { %411 = vmax.xlane.f32.xlu1 %v410_v29 }
 0x129   : > { %1194 = vmatmul.msk.f32.vlgmr.msrb.gmra.mxu2 %vm377_vm2, %v743_v19 }
 0x12c   : > { %v407_v44 = vpop.f32.mrf.mxu3 }
 0x12d   : > { %v408_v45 = vadd.f32 %v1264_v25, %v407_v44 }
 0x12e   : > { %1190 = vmatmul.msk.f32.gmra.mxu0 %vm377_vm2, %v619_v30 }
 0x12f   : > { %v413_v51 = vsel %vm377_vm2, %v408_v45, -inf }
 0x131   : > { %1195 = vmatmul.msk.f32.gmra.mxu2 %vm377_vm2, %v745_v31 }
 0x19b   : > { %v412_v46 = vpop.xlane.xlu1 %411 }
 0x19c   : > { %v518_v35 = vpop.f32.mrf.mxu2  ;;  %v416_v49 = vsub.f32 %v405_v28, %v412_v46 }
 0x19d   : > { %v519_v36 = vadd.f32 %v1264_v25, %v518_v35 }
 0x19e   : > { %v418_v53 = vmul.f32 1.442695, %v416_v49 }
 0x19f   : > { %v524_v37 = vsel %vm377_vm2, %v519_v36, -inf }
 0x1a0   : > { %525 = vmax.xlane.f32.xlu0 %v524_v37  ;;  %1274 = vpow2.f32 %v418_v53 }
 0x1a3   : > { %v645_v38 = vpop.f32.mrf.mxu0 }
 0x1a4   : > { %v646_v39 = vadd.f32 %v1264_v25, %v645_v38  ;;  %v521_v40 = vpop.f32.mrf.mxu2 }
 0x1a5   : > { %v522_v42 = vadd.f32 %v1264_v25, %v521_v40 }
 0x1a6   : > { %v651_v41 = vsel %vm377_vm2, %v646_v39, -inf  ;;  %v1567_v59 = vpop.eup %1274 }
 0x1a7   : > { %652 = vmax.xlane.f32.xlu1 %v651_v41  ;;  %v527_v43 = vsel %vm377_vm2, %v522_v42, -inf  ;;  %v422_v60 = vsel %vm377_vm2, %v1567_v59, 0.0 }
 0x1a8   : > { %528 = vmax.xlane.f32.xlu2 %v527_v43 }
 0x1ab   : > { %v648_v52 = vpop.f32.mrf.mxu0 }
 0x1ac   : > { %v771_v47 = vpop.f32.mrf.mxu2  ;;  %v649_v54 = vadd.f32 %v1264_v25, %v648_v52 }
 0x1ad   : > { %v772_v48 = vadd.f32 %v1264_v25, %v771_v47 }
 0x1ae   : > { %v654_v57 = vsel %vm377_vm2, %v649_v54, -inf }
 0x1af   : > { %v777_v50 = vsel %vm377_vm2, %v772_v48, -inf }
 0x1b0   : > { %778 = vmax.xlane.f32.xlu0 %v777_v50  ;;  %414 = vmax.xlane.f32.xlu2 %v413_v51 }
 0x1b4   : > { %v774_v55 = vpop.f32.mrf.mxu2 }
 0x1b5   : > { %v775_v56 = vadd.f32 %v1264_v25, %v774_v55 }
 0x1b7   : > { %v780_v58 = vsel %vm377_vm2, %v775_v56, -inf }
 0x1b8   : > { %655 = vmax.xlane.f32.xlu0 %v654_v57  ;;  %781 = vmax.xlane.f32.xlu2 %v780_v58 }
 0x1c0   : > { %423 = vadd.xlane.f32.xlu2 %v422_v60 }
 0x213   : > { %v526_v61 = vpop.xlane.xlu0 %525 }
 0x214   : > { %v530_v10 = vsub.f32 %v519_v36, %v526_v61 }
 0x216   : > { %v532_v12 = vmul.f32 1.442695, %v530_v10 }
 0x21a   : > { %v653_v14 = vpop.xlane.xlu1 %652 }
 0x21b   : > { %v529_v62 = vpop.xlane.xlu2 %528  ;;  %v657_v19 = vsub.f32 %v646_v39, %v653_v14 }
 0x21c   : > { %v531_v63 = vsub.f32 %v522_v42, %v529_v62 }
 0x21d   : > { %v659_v22 = vmul.f32 1.442695, %v657_v19 }
 0x21e   : > { %v534_v0 = vmul.f32 1.442695, %v531_v63 }
 0x220   : > { %1276 = vpow2.f32 %v534_v0 }
 0x223   : > { %v779_v1 = vpop.xlane.xlu0 %778  ;;  %v415_v2 = vpop.xlane.xlu2 %414 }
 0x224   : > { %v783_v3 = vsub.f32 %v772_v48, %v779_v1  ;;  %v417_v4 = vsub.f32 %v408_v45, %v415_v2 }
 0x226   : > { %v1571_v5 = vpop.eup %1276  ;;  %v785_v6 = vmul.f32 1.442695, %v783_v3  ;;  %v420_v9 = vmul.f32 1.442695, %v417_v4 }
 0x227   : > { %v539_v11 = vsel %vm377_vm2, %v1571_v5, 0.0 }
 0x228   : > { %1278 = vpow2.f32 %v785_v6  ;;  %540 = vadd.xlane.f32.xlu0 %v539_v11 }
 0x229   : > { %1280 = vpow2.f32 %v420_v9 }
 0x22a   : > { %1282 = vpow2.f32 %v532_v12 }
 0x22b   : > { %v782_v13 = vpop.xlane.xlu2 %781  ;;  %v656_v24 = vpop.xlane.xlu0 %655 }
 0x22c   : > { %v784_v15 = vsub.f32 %v775_v56, %v782_v13  ;;  %v658_v27 = vsub.f32 %v649_v54, %v656_v24 }
 0x22e   : > { %v1575_v16 = vpop.eup %1278  ;;  %v787_v17 = vmul.f32 1.442695, %v784_v15  ;;  %v661_v31 = vmul.f32 1.442695, %v658_v27 }
 0x22f   : > { %v1577_v18 = vpop.eup %1280  ;;  %v789_v20 = vsel %vm377_vm2, %v1575_v16, 0.0 }
 0x230   : > { %v425_v21 = vsel %vm377_vm2, %v1577_v18, 0.0  ;;  %790 = vadd.xlane.f32.xlu2 %v789_v20  ;;  %1284 = vpow2.f32 %v787_v17  ;;  %v1583_v25 = vpop.eup %1282 }
 0x231   : > { %426 = vadd.xlane.f32.xlu1 %v425_v21  ;;  %v536_v28 = vsel %vm377_vm2, %v1583_v25, 0.0 }
 0x233   : > { %v424_v23 = vpop.xlane.xlu2 %423 }
 0x234   : > { %1286 = vrcp.f32 %v424_v23  ;;  %v439_v36 = vand.u32 2147483648, %v424_v23  ;;  %v437_v38 = vand.u32 2147483647, %v424_v23  ;;  %vm433_vm4 = vweird.f32 %v424_v23 }
 0x235   : > { %1288 = vpow2.f32 %v659_v22 }
 0x236   : > { %v1585_v26 = vpop.eup %1284  ;;  %1290 = vpow2.f32 %v661_v31  ;;  %v440_v41 = vor.u32 1.1754944e-38, %v439_v36  ;;  %vm438_vm6 = vcmp.eq.f32.partialorder %v437_v38, 8.507059e+37 }
 0x237   : > { %v792_v29 = vsel %vm377_vm2, %v1585_v26, 0.0 }
 0x238   : > { %793 = vadd.xlane.f32.xlu2 %v792_v29 }
 0x239   : > { %537 = vadd.xlane.f32.xlu1 %v536_v28 }
 0x23a   : > { %v1287_v30 = vpop.eup %1286 }
 0x23b   : > { %v429_v32 = vmul.f32 %v1287_v30, %v424_v23  ;;  %v1593_v33 = vpop.eup %1288  ;;  %vm434_vm3 = vweird.f32 %v1287_v30 }
 0x23c   : > { %573 = vrot.lane.b32.xlu0 %v1557_v34, %s1381_s9  ;;  %v663_v39 = vsel %vm377_vm2, %v1593_v33, 0.0  ;;  %vm435_vm5 = vmor %vm433_vm4, %vm434_vm3  ;;  %v1597_v44 = vpop.eup %1290  ;;  %s1216_s9 = sshll.u32 %s1444_s25, 4  ;;  %s1066_s25 = scalar_lea.sflag [#allocation4], %s266_s18 }
 0x23d   : > { %v430_v35 = vsub.f32 1.0, %v429_v32  ;;  %v666_v46 = vsel %vm377_vm2, %v1597_v44, 0.0  ;;  %s1077_s14 = scalar_lea.hbm %s1795_s6, %s1216_s9 }
 0x23e   : > { %s1080_s16 = sshll.u32 %s1077_s14, 4  ;;  %s1081_s16 = int_to_ptr.hbm [resolvable:$true] %s1080_s16 }
 0x23f   : > { %v431_v37 = vmul.f32 %v1287_v30, %v430_v35  ;;  %s1330_s17 = sshra.s32 %s1081_s16, 4  ;;  %s1331_s17 = int_to_ptr.hbm [resolvable:$true] %s1330_s17 }
 0x240   : > { %s1332_s20 = scalar_lea.hbm %s1331_s17, 16  ;;  %p1337_p0 = scmp.lt.s32.totalorder %s1331_s17, %s1795_s6 }
 0x241   : > { %664 = vadd.xlane.f32.xlu1 %v663_v39  ;;  %v432_v40 = vadd.f32 %v1287_v30, %v431_v37  ;;  %p1333_p11 = scmp.ne.s32.totalorder %s1331_s17, %s1332_s20  ;;  %p1338_p1 = scmp.lt.s32.totalorder %s1336_s28, %s1332_s20 }
 0x243   : > { %v436_v42 = vsel %vm435_vm5, %v1287_v30, %v432_v40  ;;  %p1334_p12 = pnand %p1333_p11, %p1461_p5  ;;  %p1339_p2 = por %p1338_p1, %p1337_p0 }
 0x244   : > { %v441_v43 = vsel %vm438_vm6, %v440_v41, %v436_v42 }
 0x245   : > { %v456_v45 = vmul.f32 %v1567_v59, %v441_v43  ;;  %p1335_p13 = pneg %p1334_p12 }
 0x247   : > { %1181 = vmatmul.msk.f32.vlgmr.msra.gmra.mxu1 %vm377_vm2, %v456_v45  ;;  %p1340_p3 = pnand %p1339_p2, %p1335_p13 }
 0x249   : > { %667 = vadd.xlane.f32.xlu1 %v666_v46 }
 0x250   : > { %825 = vrot.lane.b32.xlu2 %v1557_v34, %s1380_s29  ;;  %s1168_s29 = sshll.u32 %s266_s18, 4 }
 0x262   : > { %699 = vrot.lane.b32.xlu1 %v1557_v34, %s1382_s11  ;;  %s268_s11 = scalar_lea.vmem [#allocation3], %s1168_s29 }
 0x263   : > { %s1078_s15 = sshll.u32 %s268_s11, 4  ;;  %s1079_s15 = int_to_ptr.vmem [resolvable:$true] %s1078_s15 }
 0x29b   : > { %v1607_v47 = vpop.xlane.xlu0 %540 }
 0x29c   : > { %v567_v27 = vand.u32 2147483648, %v1607_v47  ;;  %vm561_vm0 = vweird.f32 %v1607_v47  ;;  %v565_v31 = vand.u32 2147483647, %v1607_v47 }
 0x29e   : > { %v568_v37 = vor.u32 1.1754944e-38, %v567_v27  ;;  %vm566_vm4 = vcmp.eq.f32.partialorder %v565_v31, 8.507059e+37 }
 0x2a3   : > { %v1609_v48 = vpop.xlane.xlu2 %790 }
 0x2a4   : > { %v427_v49 = vpop.xlane.xlu1 %426  ;;  %v806_v43 = vand.u32 2147483648, %v1609_v48  ;;  %vm800_vm6 = vweird.f32 %v1609_v48 }
 0x2a5   : > { %1292 = vrcp.f32 %v427_v49  ;;  %v453_v58 = vand.u32 2147483648, %v427_v49  ;;  %v451_v59 = vand.u32 2147483647, %v427_v49  ;;  %vm447_vm8 = vweird.f32 %v427_v49 }
 0x2a6   : > { %1294 = vrcp.f32 %v1607_v47 }
 0x2a7   : > { %v454_v63 = vor.u32 1.1754944e-38, %v453_v58  ;;  %vm452_vm10 = vcmp.eq.f32.partialorder %v451_v59, 8.507059e+37 }
 0x2ab   : > { %v1293_v50 = vpop.eup %1292  ;;  %v1614_v53 = vpop.xlane.xlu2 %793 }
 0x2ac   : > { %v1612_v51 = vpop.eup %1294  ;;  %v443_v52 = vmul.f32 %v1293_v50, %v427_v49  ;;  %v538_v54 = vpop.xlane.xlu1 %537  ;;  %vm448_vm7 = vweird.f32 %v1293_v50 }
 0x2ad   : > { %1296 = vrcp.f32 %v538_v54  ;;  %v557_v34 = vmul.f32 %v1612_v51, %v1607_v47  ;;  %vm449_vm9 = vmor %vm447_vm8, %vm448_vm7  ;;  %v553_v12 = vand.u32 2147483648, %v538_v54  ;;  %v551_v15 = vand.u32 2147483647, %v538_v54 }
 0x2ae   : > { %v444_v55 = vsub.f32 1.0, %v443_v52  ;;  %v574_v56 = vpop.permute.xlu0 %573  ;;  %1298 = vrcp.f32 %v1609_v48  ;;  %vm547_vm12 = vweird.f32 %v538_v54  ;;  %vm562_vm14 = vweird.f32 %v1612_v51 }
 0x2af   : > { %597 = vmatpush.msrb.mxu3 %v574_v56  ;;  %v558_v62 = vsub.f32 1.0, %v557_v34  ;;  %v554_v20 = vor.u32 1.1754944e-38, %v553_v12  ;;  %vm552_vm15 = vcmp.eq.f32.partialorder %v551_v15, 8.507059e+37  ;;  %vm563_vm3 = vmor %vm561_vm0, %vm562_vm14  ;;  %v804_v47 = vand.u32 2147483647, %v1609_v48 }
 0x2b0   : > { %v445_v57 = vmul.f32 %v1293_v50, %v444_v55  ;;  %v807_v52 = vor.u32 1.1754944e-38, %v806_v43  ;;  %v1386_v43 = vmov 32.0  }
 0x2b1   : > { %v559_v11 = vmul.f32 %v1612_v51, %v558_v62  ;;  %v818_v62 = vand.u32 2147483647, %v1614_v53 }
 0x2b2   : > { %v446_v60 = vadd.f32 %v1293_v50, %v445_v57  ;;  %v820_v57 = vand.u32 2147483648, %v1614_v53 }
 0x2b3   : > { %v1297_v61 = vpop.eup %1296  ;;  %v826_v0 = vpop.permute.xlu2 %825  ;;  %v560_v21 = vadd.f32 %v1612_v51, %v559_v11 }
 0x2b4   : > { %v1619_v1 = vpop.xlane.xlu1 %664  ;;  %v450_v2 = vsel %vm449_vm9, %v1293_v50, %v446_v60  ;;  %v543_v3 = vmul.f32 %v1297_v61, %v538_v54  ;;  %849 = vmatpush.msra.mxu3 %v826_v0  ;;  %v1622_v4 = vpop.eup %1298  ;;  %vm548_vm11 = vweird.f32 %v1297_v61  ;;  %vm805_vm9 = vcmp.eq.f32.partialorder %v804_v47, 8.507059e+37 }
 0x2b5   : > { %1300 = vrcp.f32 %v1619_v1  ;;  %v455_v6 = vsel %vm452_vm10, %v454_v63, %v450_v2  ;;  %v796_v13 = vmul.f32 %v1622_v4, %v1609_v48  ;;  %vm549_vm13 = vmor %vm547_vm12, %vm548_vm11  ;;  %v564_v36 = vsel %vm563_vm3, %v1612_v51, %v560_v21  ;;  %v1200_v21 = vld [vmem:[%s1792_s3 + $0x30] sm:$0xff] }
 0x2b6   : > { %v544_v9 = vsub.f32 1.0, %v543_v3  ;;  %v457_v10 = vmul.f32 %v1577_v18, %v455_v6  ;;  %1302 = vrcp.f32 %v1614_v53  ;;  %v569_v41 = vsel %vm566_vm4, %v568_v37, %v564_v36 }
 0x2b7   : > { %v797_v22 = vsub.f32 1.0, %v796_v13  ;;  %vm801_vm5 = vweird.f32 %v1622_v4  ;;  %v571_v49 = vmul.f32 %v1571_v5, %v569_v41  ;;  %v680_v56 = vand.u32 2147483648, %v1619_v1 }
 0x2b8   : > { %v545_v14 = vmul.f32 %v1297_v61, %v544_v9  ;;  %1182 = vmatmul.msk.f32.gmra.mxu1 %vm377_vm2, %v457_v10  ;;  %vm802_vm7 = vmor %vm800_vm6, %vm801_vm5  ;;  %vm674_vm10 = vweird.f32 %v1619_v1  ;;  %v678_v5 = vand.u32 2147483647, %v1619_v1  ;;  %vm819_vm3 = vcmp.eq.f32.partialorder %v818_v62, 8.507059e+37 }
 0x2b9   : > { %v798_v32 = vmul.f32 %v1622_v4, %v797_v22  ;;  %v681_v60 = vor.u32 1.1754944e-38, %v680_v56  ;;  %v1199_v22 = vld [vmem:[%s1792_s3 + $0x28] sm:$0xff] }
 0x2ba   : > { %v546_v19 = vadd.f32 %v1297_v61, %v545_v14  ;;  %vm679_vm14 = vcmp.eq.f32.partialorder %v678_v5, 8.507059e+37 }
 0x2bb   : > { %v1630_v17 = vpop.eup %1300 }
 0x2bc   : > { %v1632_v18 = vpop.xlane.xlu1 %667  ;;  %v550_v23 = vsel %vm549_vm13, %v1297_v61, %v546_v19  ;;  %v1637_v24 = vpop.eup %1302  ;;  %v670_v28 = vmul.f32 %v1630_v17, %v1619_v1  ;;  %vm675_vm8 = vweird.f32 %v1630_v17  ;;  %vm814_vm13 = vweird.f32 %v1614_v53 }
 0x2bd   : > { %1304 = vrcp.f32 %v1632_v18  ;;  %v555_v29 = vsel %vm552_vm15, %v554_v20, %v550_v23  ;;  %v810_v35 = vmul.f32 %v1637_v24, %v1614_v53  ;;  %vm676_vm11 = vmor %vm674_vm10, %vm675_vm8  ;;  %vm815_vm12 = vweird.f32 %v1637_v24  ;;  %v1198_v23 = vld [vmem:[%s1792_s3 + $0x20] sm:$0xff] }
 0x2be   : > { %v570_v30 = vmul.f32 %v1583_v25, %v555_v29  ;;  %v671_v38 = vsub.f32 1.0, %v670_v28  ;;  %v799_v25 = vadd.f32 %v1622_v4, %v798_v32  ;;  %vm816_vm15 = vmor %vm814_vm13, %vm815_vm12  ;;  %v821_v1 = vor.u32 1.1754944e-38, %v820_v57 }
 0x2bf   : > { %v811_v42 = vsub.f32 1.0, %v810_v35  ;;  %v694_v3 = vand.u32 2147483648, %v1632_v18  ;;  %vm688_vm4 = vweird.f32 %v1632_v18  ;;  %v692_v53 = vand.u32 2147483647, %v1632_v18  ;;  %v1268_v35 = vld [vmem:[%s1794_s5 + $0x3] ss:$0 sm:$0xff] }
 0x2c0   : > { %1186 = vmatmul.msk.f32.vlgmr.msrb.gmra.mxu3 %vm377_vm2, %v570_v30  ;;  %v672_v45 = vmul.f32 %v1630_v17, %v671_v38  ;;  %v803_v50 = vsel %vm802_vm7, %v1622_v4, %v799_v25  ;;  %vm613_vm7 = vcmask 130112   ;;  %vm865_vm8 = vcmask 261312  }
 0x2c1   : > { %v812_v51 = vmul.f32 %v1637_v24, %v811_v42  ;;  %v808_v34 = vsel %vm805_vm9, %v807_v52, %v803_v50  ;;  %v695_v10 = vor.u32 1.1754944e-38, %v694_v3  ;;  %vm693_vm6 = vcmp.eq.f32.partialorder %v692_v53, 8.507059e+37 }
 0x2c2   : > { %v673_v54 = vadd.f32 %v1630_v17, %v672_v45  ;;  %v823_v61 = vmul.f32 %v1575_v16, %v808_v34  ;;  %1306 = vrcp.f32 %v1386_v43 }
 0x2c3   : > { %v1305_v39 = vpop.eup %1304  ;;  %v813_v48 = vadd.f32 %v1637_v24, %v812_v51 }
 0x2c4   : > { %v481_v40 = vpop.f32.mrf.mxu1  ;;  %v684_v46 = vmul.f32 %v1305_v39, %v1632_v18  ;;  %v677_v59 = vsel %vm676_vm11, %v1630_v17, %v673_v54  ;;  %vm689_vm0 = vweird.f32 %v1305_v39  ;;  %v1201_v18 = vld [vmem:[%s1792_s3 + $0x38] sm:$0xff] }
 0x2c5   : > { %487 = vst.msk [vmem:[#allocation2] sm:$0xff] %vm377_vm2, %v481_v40  ;;  %v682_v63 = vsel %vm679_vm14, %v681_v60, %v677_v59  ;;  %v817_v0 = vsel %vm816_vm15, %v1637_v24, %v813_v48  ;;  %vm690_vm5 = vmor %vm688_vm4, %vm689_vm0  ;;  %895 = vmatpush.msra.mxu0 %v1201_v18  ;;  %v1206_v59 = vld [vmem:[%s1792_s3 + $0x50] sm:$0xff]  ;;  %v1205_v60 = vld [vmem:[%s1792_s3 + $0x48] sm:$0xff] }
 0x2c6   : > { %v685_v55 = vsub.f32 1.0, %v684_v46  ;;  %v697_v16 = vmul.f32 %v1593_v33, %v682_v63  ;;  %v822_v6 = vsel %vm819_vm3, %v821_v1, %v817_v0 }
 0x2c7   : > { %v824_v11 = vmul.f32 %v1585_v26, %v822_v6  ;;  %896 = vmatpush.msra.mxu0 %v1200_v21 }
 0x2c8   : > { %1187 = vmatmul.msk.f32.gmra.mxu3 %vm377_vm2, %v571_v49  ;;  %v686_v58 = vmul.f32 %v1305_v39, %v685_v55  ;;  %v1307_v45 = vpop.eup %1306 }
 0x2c9   : > { %897 = vmatpush.msra.mxu0 %v1199_v22  ;;  %v915_v46 = vmul.f32 32.0, %v1307_v45  ;;  %vm919_vm9 = vweird.f32 %v1307_v45 }
 0x2ca   : > { %v687_v2 = vadd.f32 %v1305_v39, %v686_v58  ;;  %v1207_v58 = vld [vmem:[%s1792_s3 + $0x58] sm:$0xff] }
 0x2cb   : > { %898 = vmatpush.msra.mxu0 %v1198_v23  ;;  %v916_v47 = vsub.f32 1.0, %v915_v46 }
 0x2cc   : > { %v691_v9 = vsel %vm690_vm5, %v1305_v39, %v687_v2 }
 0x2cd   : > { %v696_v12 = vsel %vm693_vm6, %v695_v10, %v691_v9  ;;  %v917_v49 = vmul.f32 %v1307_v45, %v916_v47 }
 0x2ce   : > { %v698_v13 = vmul.f32 %v1597_v44, %v696_v12 }
 0x2cf   : > { %v918_v50 = vadd.f32 %v1307_v45, %v917_v49 }
 0x2d0   : > { %1196 = vmatmul.msk.f32.vlgmr.msra.gmra.mxu3 %vm377_vm2, %v823_v61  ;;  %v1204_v61 = vld [vmem:[%s1792_s3 + $0x40] sm:$0xff] }
 0x2d1   : > { %v1709_v51 = vsel %vm919_vm9, %v1307_v45, %v918_v50 }
 0x2d4   : > { %v700_v4 = vpop.permute.xlu1 %699 }
 0x2d5   : > { %723 = vmatpush.msrb.mxu1 %v700_v4 }
 0x2d6   : > { %1191 = vmatmul.msk.f32.vlgmr.msrb.gmra.mxu1 %vm377_vm2, %v697_v16 }
 0x2d7   : > { %992 = vmatpush.msra.mxu1 %v1207_v58 }
 0x2d8   : > { %1197 = vmatmul.msk.f32.gmra.mxu3 %vm377_vm2, %v824_v11 }
 0x2d9   : > { %993 = vmatpush.msra.mxu1 %v1206_v59 }
 0x2db   : > { %994 = vmatpush.msra.mxu1 %v1205_v60 }
 0x2dd   : > { %995 = vmatpush.msra.mxu1 %v1204_v61 }
 0x2de   : > { %1192 = vmatmul.msk.f32.gmra.mxu1 %vm377_vm2, %v698_v13  ;;  %v1269_v13 = vld [vmem:[%s1794_s5 + $0x4] ss:$0 sm:$0xff] }
 0x335   : > { %v484_v33 = vpop.f32.mrf.mxu1 }
 0x336   : > { %488 = vst.msk [vmem:[#allocation2 + $0x8] sm:$0xff] %vm377_vm2, %v484_v33  ;;  %vm739_vm2 = vcmask 195712  }
 0x343   : > { %v599_v14 = vpop.f32.mrf.mxu3 }
 0x34b   : > { %v602_v15 = vpop.f32.mrf.mxu3 }
 0x34c   : > { %609 = vrot.lane.b32.xlu2 %v602_v15, %s1383_s19 }
 0x353   : > { %v725_v17 = vpop.f32.mrf.mxu1  ;;  %v851_v19 = vpop.f32.mrf.mxu3 }
 0x354   : > { %733 = vrot.lane.b32.xlu0 %v725_v17, %s1384_s10  ;;  %v1270_v17 = vld [vmem:[%s1794_s5 + $0x5] ss:$0 sm:$0xff] }
 0x35b   : > { %v728_v26 = vpop.f32.mrf.mxu1  ;;  %v854_v44 = vpop.f32.mrf.mxu3 }
 0x35c   : > { %607 = vrot.lane.b32.xlu0 %v599_v14, %s1383_s19  ;;  %735 = vrot.lane.b32.xlu1 %v728_v26, %s1384_s10 }
 0x364   : > { %859 = vrot.lane.b32.xlu0 %v851_v19, %s1385_s26 }
 0x36c   : > { %861 = vrot.lane.b32.xlu0 %v854_v44, %s1385_s26 }
 0x3a6   : > { %v610_v20 = vpop.permute.xlu2 %609 }
 0x3a7   : > { %615 = vst.msk [vmem:[#allocation2 + $0x8] sm:$0xff] %vm613_vm7, %v610_v20 }
 0x3c6   : > { %v734_v24 = vpop.permute.xlu0 %733 }
 0x3ce   : > { %v608_v27 = vpop.permute.xlu0 %607  ;;  %v736_v28 = vpop.permute.xlu1 %735 }
 0x3cf   : > { %614 = vst.msk [vmem:[#allocation2] sm:$0xff] %vm613_vm7, %v608_v27  ;;  %v1271_v27 = vld [vmem:[%s1794_s5 + $0x6] ss:$0 sm:$0xff] }
 0x3d0   : > { %741 = vst.msk [vmem:[#allocation2 + $0x8] sm:$0xff] %vm739_vm2, %v736_v28 }
 0x3d1   : > { %740 = vst.msk [vmem:[#allocation2] sm:$0xff] %vm739_vm2, %v734_v24 }
 0x3d6   : > { %v860_v29 = vpop.permute.xlu0 %859 }
 0x3d7   : > { %866 = vst.msk [vmem:[#allocation2] sm:$0xff] %vm865_vm8, %v860_v29 }
 0x3de   : > { %v862_v30 = vpop.permute.xlu0 %861  ;;  %v868_v31 = vld [vmem:[#allocation2] sm:$0xff] }
 0x3df   : > { %867 = vst.msk [vmem:[#allocation2 + $0x8] sm:$0xff] %vm865_vm8, %v862_v30  ;;  %1202 = vmatmul.msk.f32.vlgmr.msra.gmra.mxu0 %vm291_vm1, %v868_v31 }
 0x3e6   : > { %v869_v32 = vld [vmem:[#allocation2 + $0x8] sm:$0xff] }
 0x3e7   : > { %1203 = vmatmul.msk.f32.gmra.mxu0 %vm291_vm1, %v869_v32 }
 0x45c   : > { %v900_v36 = vpop.f32.mrf.mxu0 }
 0x45d   : > { %v901_v37 = vadd.f32 %v1268_v35, %v900_v36 }
 0x45f   : > { %v906_v38 = vadd.f32 %v901_v37, %v1506_v7 }
 0x461   : > { %v908_v39 = vsel %vm291_vm1, %v906_v38, 0.0 }
 0x462   : > { %909 = vadd.xlane.f32.xlu2 %v908_v39 }
 0x464   : > { %v903_v40 = vpop.f32.mrf.mxu0 }
 0x465   : > { %v904_v41 = vadd.f32 %v1268_v35, %v903_v40 }
 0x467   : > { %v907_v25 = vadd.f32 %v904_v41, %v1510_v8 }
 0x469   : > { %v911_v42 = vsel %vm291_vm1, %v907_v25, 0.0 }
 0x46a   : > { %912 = vadd.xlane.f32.xlu1 %v911_v42 }
 0x4d5   : > { %v910_v7 = vpop.xlane.xlu2 %909 }
 0x4d6   : > { %v921_v52 = vmul.f32 %v1709_v51, %v910_v7 }
 0x4d8   : > { %v923_v54 = vsub.f32 %v906_v38, %v921_v52 }
 0x4da   : > { %v925_v55 = vmul.f32 %v923_v54, %v923_v54 }
 0x4dc   : > { %v927_v8 = vsel %vm291_vm1, %v925_v55, 0.0 }
 0x4dd   : > { %928 = vadd.xlane.f32.xlu0 %v927_v8  ;;  %v913_v56 = vpop.xlane.xlu1 %912 }
 0x4de   : > { %v922_v34 = vmul.f32 %v1709_v51, %v913_v56 }
 0x4e0   : > { %v924_v5 = vsub.f32 %v907_v25, %v922_v34 }
 0x4e2   : > { %v926_v48 = vmul.f32 %v924_v5, %v924_v5 }
 0x4e4   : > { %v930_v57 = vsel %vm291_vm1, %v926_v48, 0.0 }
 0x4e5   : > { %931 = vadd.xlane.f32.xlu2 %v930_v57 }
 0x550   : > { %v929_v62 = vpop.xlane.xlu0 %928 }
 0x551   : > { %v933_v63 = vmul.f32 %v929_v62, %v1709_v51 }
 0x553   : > { %v935_v0 = vadd.f32 1e-05, %v933_v63 }
 0x555   : > { %1308 = vrsqrt.f32 %v935_v0  ;;  %vm943_vm11 = vweird.f32 %v935_v0 }
 0x558   : > { %v932_v1 = vpop.xlane.xlu2 %931 }
 0x559   : > { %v934_v2 = vmul.f32 %v932_v1, %v1709_v51 }
 0x55b   : > { %v1309_v3 = vpop.eup %1308  ;;  %v936_v4 = vadd.f32 1e-05, %v934_v2  ;;  %v1273_v2 = vld [vmem:[%s1794_s5 + $0x8] ss:$0 sm:$0xff] }
 0x55c   : > { %v938_v16 = vmul.f32 %v1309_v3, %v935_v0  ;;  %vm944_vm10 = vweird.f32 %v1309_v3  ;;  %v1272_v0 = vld [vmem:[%s1794_s5 + $0x7] ss:$0 sm:$0xff] }
 0x55d   : > { %1310 = vrsqrt.f32 %v936_v4  ;;  %vm945_vm12 = vmor %vm943_vm11, %vm944_vm10  ;;  %vm953_vm14 = vweird.f32 %v936_v4 }
 0x55e   : > { %v939_v6 = vmul.f32 %v1309_v3, %v938_v16 }
 0x560   : > { %v940_v53 = vmul.f32 0.5, %v939_v6 }
 0x562   : > { %v941_v9 = vsub.f32 1.5, %v940_v53 }
 0x563   : > { %v1311_v10 = vpop.eup %1310 }
 0x564   : > { %v942_v11 = vmul.f32 %v1309_v3, %v941_v9  ;;  %v948_v12 = vmul.f32 %v1311_v10, %v936_v4  ;;  %vm954_vm13 = vweird.f32 %v1311_v10 }
 0x565   : > { %vm955_vm15 = vmor %vm953_vm14, %vm954_vm13 }
 0x566   : > { %v946_v33 = vsel %vm945_vm12, %v1309_v3, %v942_v11  ;;  %v949_v14 = vmul.f32 %v1311_v10, %v948_v12 }
 0x567   : > { %v957_v15 = vmul.f32 %v946_v33, %v923_v54 }
 0x568   : > { %v950_v26 = vmul.f32 0.5, %v949_v14 }
 0x569   : > { %v961_v19 = vmul.f32 %v1269_v13, %v957_v15 }
 0x56a   : > { %v951_v44 = vsub.f32 1.5, %v950_v26 }
 0x56b   : > { %v965_v20 = vadd.f32 %v1270_v17, %v961_v19 }
 0x56c   : > { %v952_v18 = vmul.f32 %v1311_v10, %v951_v44 }
 0x56d   : > { %1208 = vmatmul.msk.f32.vlgmr.msra.gmra.mxu1 %vm291_vm1, %v965_v20 }
 0x56e   : > { %v956_v21 = vsel %vm955_vm15, %v1311_v10, %v952_v18 }
 0x56f   : > { %v958_v22 = vmul.f32 %v956_v21, %v924_v5 }
 0x571   : > { %v962_v23 = vmul.f32 %v1269_v13, %v958_v22 }
 0x573   : > { %v966_v24 = vadd.f32 %v1270_v17, %v962_v23 }
 0x575   : > { %1209 = vmatmul.msk.f32.gmra.mxu1 %vm291_vm1, %v966_v24 }
 0x5ea   : > { %v997_v28 = vpop.f32.mrf.mxu1 }
 0x5eb   : > { %v998_v29 = vadd.f32 %v1271_v27, %v997_v28 }
 0x5ed   : > { %vm1003_vm0 = vcmp.ge.f32.partialorder %v998_v29, 0.0  ;;  %v1005_v30 = vmul.f32 0.01, %v998_v29 }
 0x5ef   : > { %v1007_v31 = vsel %vm1003_vm0, %v998_v29, %v1005_v30 }
 0x5f0   : > { %v1009_v32 = vadd.f32 %v1007_v31, %v965_v20 }
 0x5f2   : > { %v1000_v35 = vpop.f32.mrf.mxu1  ;;  %v1011_v36 = vsel %vm291_vm1, %v1009_v32, 0.0 }
 0x5f3   : > { %v1001_v37 = vadd.f32 %v1271_v27, %v1000_v35  ;;  %1012 = vadd.xlane.f32.xlu1 %v1011_v36 }
 0x5f5   : > { %vm1004_vm3 = vcmp.ge.f32.partialorder %v1001_v37, 0.0  ;;  %v1006_v38 = vmul.f32 0.01, %v1001_v37 }
 0x5f7   : > { %v1008_v39 = vsel %vm1004_vm3, %v1001_v37, %v1006_v38 }
 0x5f8   : > { %v1010_v40 = vadd.f32 %v1008_v39, %v966_v24 }
 0x5fa   : > { %v1014_v41 = vsel %vm291_vm1, %v1010_v40, 0.0 }
 0x5fb   : > { %1015 = vadd.xlane.f32.xlu0 %v1014_v41 }
 0x666   : > { %v1013_v25 = vpop.xlane.xlu1 %1012 }
 0x667   : > { %v1017_v42 = vmul.f32 %v1013_v25, %v1709_v51 }
 0x669   : > { %v1019_v43 = vsub.f32 %v1009_v32, %v1017_v42 }
 0x66b   : > { %v1021_v45 = vmul.f32 %v1019_v43, %v1019_v43 }
 0x66d   : > { %v1023_v46 = vsel %vm291_vm1, %v1021_v45, 0.0 }
 0x66e   : > { %v1016_v47 = vpop.xlane.xlu0 %1015  ;;  %1024 = vadd.xlane.f32.xlu2 %v1023_v46 }
 0x66f   : > { %v1018_v49 = vmul.f32 %v1016_v47, %v1709_v51 }
 0x671   : > { %v1020_v50 = vsub.f32 %v1010_v40, %v1018_v49 }
 0x673   : > { %v1022_v7 = vmul.f32 %v1020_v50, %v1020_v50 }
 0x675   : > { %v1026_v52 = vsel %vm291_vm1, %v1022_v7, 0.0 }
 0x676   : > { %1027 = vadd.xlane.f32.xlu1 %v1026_v52 }
 0x6e1   : > { %v1025_v54 = vpop.xlane.xlu2 %1024 }
 0x6e2   : > { %v1029_v55 = vmul.f32 %v1025_v54, %v1709_v51 }
 0x6e4   : > { %v1031_v8 = vadd.f32 1e-05, %v1029_v55 }
 0x6e6   : > { %1312 = vrsqrt.f32 %v1031_v8  ;;  %vm1039_vm5 = vweird.f32 %v1031_v8 }
 0x6e9   : > { %v1028_v56 = vpop.xlane.xlu1 %1027 }
 0x6ea   : > { %v1030_v34 = vmul.f32 %v1028_v56, %v1709_v51 }
 0x6ec   : > { %v1313_v5 = vpop.eup %1312  ;;  %v1032_v48 = vadd.f32 1e-05, %v1030_v34 }
 0x6ed   : > { %v1034_v57 = vmul.f32 %v1313_v5, %v1031_v8  ;;  %vm1040_vm4 = vweird.f32 %v1313_v5 }
 0x6ee   : > { %1314 = vrsqrt.f32 %v1032_v48  ;;  %vm1041_vm6 = vmor %vm1039_vm5, %vm1040_vm4  ;;  %vm1049_vm2 = vweird.f32 %v1032_v48 }
 0x6ef   : > { %v1035_v58 = vmul.f32 %v1313_v5, %v1034_v57 }
 0x6f1   : > { %v1036_v59 = vmul.f32 0.5, %v1035_v58 }
 0x6f3   : > { %v1037_v60 = vsub.f32 1.5, %v1036_v59 }
 0x6f4   : > { %v1315_v61 = vpop.eup %1314 }
 0x6f5   : > { %v1038_v62 = vmul.f32 %v1313_v5, %v1037_v60  ;;  %v1044_v63 = vmul.f32 %v1315_v61, %v1032_v48  ;;  %vm1050_vm7 = vweird.f32 %v1315_v61 }
 0x6f6   : > { %vm1051_vm8 = vmor %vm1049_vm2, %vm1050_vm7 }
 0x6f7   : > { %v1042_v51 = vsel %vm1041_vm6, %v1313_v5, %v1038_v62  ;;  %v1045_v1 = vmul.f32 %v1315_v61, %v1044_v63 }
 0x6f8   : > { %v1053_v3 = vmul.f32 %v1042_v51, %v1019_v43 }
 0x6f9   : > { %v1046_v4 = vmul.f32 0.5, %v1045_v1 }
 0x6fa   : > { %v1057_v16 = vmul.f32 %v1272_v0, %v1053_v3 }
 0x6fb   : > { %v1047_v6 = vsub.f32 1.5, %v1046_v4 }
 0x6fc   : > { %v1061_v53 = vadd.f32 %v1273_v2, %v1057_v16 }
 0x6fd   : > { %v1048_v9 = vmul.f32 %v1315_v61, %v1047_v6 }
 0x6fe   : > { %1063 = vst.msk [vmem:[%s268_s11] sm:$0xff] %vm291_vm1, %v1061_v53 }
 0x6ff   : > { %v1052_v10 = vsel %vm1051_vm8, %v1315_v61, %v1048_v9 }
 0x700   : > { %v1054_v11 = vmul.f32 %v1052_v10, %v1020_v50 }
 0x702   : > { %v1058_v12 = vmul.f32 %v1272_v0, %v1054_v11 }
 0x704   : > { %v1062_v13 = vadd.f32 %v1273_v2, %v1058_v12 }
 0x706   : > { %1064 = vst.msk [vmem:[%s268_s11 + $0x8] sm:$0xff] %vm291_vm1, %v1062_v13 }
 0x707   : > { %1343 = shalt.err (!%p1340_p3)
}
 0x708   : > { %s1387_s18 = smov 128  }
 0x709   : > { %1217 = dma.vmem_to_hbm [thread:$0]  (%p1461_p5), %s1079_s15, 256, %s1081_s16, %s1066_s25, %s1387_s18, %s1387_s18, %s1383_s19  }
 0x70a PF: > { %p1223_p4 = scmp.ge.s32.totalorder %s1378_s24, 2  ;;  %s1095_s11 = sand.u32 1, %s1366_s21  }
 0x70b   : > { %s1096_s12 = scalar_lea.sflag [#allocation4], %s1095_s11 }
 0x70c   : > { %p1220_p7 = pnand %p1223_p4, %p1465_p6 }
 0x70e   : > { %p1221_p8 = pneg %p1220_p7 }
 0x710   : > { %1361 = dma.done.wait (%p1221_p8), %s1096_s12, 256  }
 0x711   : > { %1363 = vsyncadd (%p1221_p8), %s1096_s12, 4294967040  ;;  %p16_p9 = scmp.ge.s32.totalorder %s1448_s27, 4   ;;  %s1798_s21 = smov %s1370_s22 }
 0x712   : > { %s1799_s22 = smov %s1374_s23  ;;  %s1800_s23 = smov %s1459_s30 }
 0x713   : > { %s1801_s24 = smov %s1448_s27  ;;  %18 = sbr.rel (!%p16_p9) target bundleno = 3 (0x3), region = 88 }
 0x718   :  { %1102 = vsyncpa [#allocation4], 1 }
 0x719   :  { %1104 = vsyncpa [#allocation4 + $0x1], 1 }

// kernel: cross_attention_graph_block_padded.1
= control target key start
LH: loop header
LB: loop body
LE: loop exit
PB: predicated region body
PF: predicated region fallthrough
CT: control target
= control target key end

     0   :  { %11 = vsyncpa [#allocation4], 0  ;;  %s1789_s0 = inlined_call_operand.vmem [shape: f32[2,16,32], index: 0, kind: input, shape index: {}]   ;;  %s1790_s1 = inlined_call_operand.vmem [shape: f32[2,8,16], index: 1, kind: input, shape index: {}]   ;;  %s1791_s2 = inlined_call_operand.vmem [shape: f32[2,1,8], index: 2, kind: input, shape index: {}]   ;;  %s1792_s3 = inlined_call_operand.vmem [shape: f32[3,32,32], index: 3, kind: input, shape index: {}]   ;;  %s1793_s4 = inlined_call_operand.vmem [shape: f32[2,16,32], index: 4, kind: input, shape index: {}]   ;;  %s1794_s5 = inlined_call_operand.vmem [shape: f32[9,32], index: 5, kind: input, shape index: {}]   ;;  %s1795_s6 = inlined_call_operand.hbm [shape: f32[2,16,32], index: 6, kind: output, shape index: {}]  }
   0x1   :  { %13 = vsyncpa [#allocation4 + $0x1], 0  ;;  %s1423_s21 = smov 0   ;;  %s1425_s22 = smov 0  }
   0x2   :  { %s1427_s23 = smov 0   ;;  %s1429_s24 = smov 0  }
   0x3 LB: > { %s1444_s25 = sadd.s32 4294967295, %s1378_s24   ;;  %s1164_s26 = sadd.s32 4294967294, %s1378_s24   ;;  %s1378_s24 = sphi %s1429_s24, %s1801_s24   ;;  %s1374_s23 = sphi %s1427_s23, %s1800_s23   ;;  %s1370_s22 = sphi %s1425_s22, %s1799_s22   ;;  %s1366_s21 = sphi %s1423_s21, %s1798_s21  }
   0x4   : > { %s1448_s27 = sadd.s32 1, %s1378_s24   ;;  %s167_s28 = sadd.s32 1, %s1374_s23 }
   0x5   : > { %s164_s29 = ssub.s32 %s1378_s24, %s1448_s27  ;;  %p177_p0 = scmp.ne.s32.totalorder %s1374_s23, %s1370_s22 }
   0x6   : > { %p165_p1 = scmp.eq.s32.totalorder %s164_s29, 0  ;;  %p178_p2 = scmp.eq.s32.totalorder %s1444_s25, 1 }
   0x7   : > { %p183_p3 = scmp.ne.s32.totalorder %s1370_s22, %s1366_s21  ;;  %p184_p4 = scmp.eq.s32.totalorder %s1164_s26, 1 }
   0x8   : > { %s1459_s30 = scalar_select %p165_p1, %s1374_s23, %s167_s28  }
   0x9   : > { %p1461_p5 = por %p178_p2, %p177_p0  ;;  %p1465_p6 = por %p184_p4, %p183_p3 }
   0xa   : > { %p1167_p7 = scmp.ge.s32.totalorder %s1378_s24, 1  ;;  %p232_p8 = scmp.lt.s32.totalorder %s1378_s24, 3 }
   0xc   : > { %p233_p9 = pnand %p1167_p7, %p232_p8 }
   0xd   : > { %p269_p10 = scmp.lt.s32.totalorder (!%p233_p9), %s1444_s25, 1  ;;  %s1380_s29 = smov (!%p233_p9), 104  }
   0xe   : > { %236 = sbr.rel (%p233_p9) target bundleno = 1802 (0x70a), region = 44  ;;  %s1381_s9 = smov (!%p233_p9), 120  }
   0xf   : > { %s1382_s11 = smov (!%p233_p9), 112   ;;  %s1385_s26 = smov (!%p233_p9), 24  }
  0x10   : > { %s266_s18 = sand.u32 (!%p233_p9), 1, %s1370_s22  }
  0x13   : > { %v288_v0 = vld [vmem:[%s1792_s3 + $0x18] sm:$0xff]  ;;  %v287_v1 = vld [vmem:[%s1792_s3 + $0x10] sm:$0xff]  ;;  %v322_v2 = vld [vmem:[%s1793_s4 + $0x8] sm:$0xff]  ;;  %s1488_s19 = scalar_select %p269_p10, %s1444_s25, 1  ;;  %vm325_vm0 = vcmask 130048   ;;  %vm291_vm1 = vcmask 261120  }
  0x14   : > { %310 = vmatpush.msra.mxu0 %v288_v0  ;;  %343 = vmatpush.msra.mxu2 %v322_v2  ;;  %v321_v3 = vld [vmem:[%s1793_s4] sm:$0xff]  ;;  %v286_v4 = vld [vmem:[%s1792_s3 + $0x8] sm:$0xff]  ;;  %vm377_vm2 = vcmask 64512   ;;  %v1176_v17 = vld [vmem:[%s1793_s4 + $0x18] sm:$0xff] }
  0x15   : > { %v285_v5 = vld [vmem:[%s1792_s3] sm:$0xff]  ;;  %s1171_s28 = sshll.u32 %s1488_s19, 3  ;;  %s280_s10 = scalar_lea.vmem %s1791_s2, %s1488_s19  ;;  %v1175_v18 = vld [vmem:[%s1793_s4 + $0x10] sm:$0xff] }
  0x16   : > { %311 = vmatpush.msra.mxu0 %v287_v1  ;;  %344 = vmatpush.msra.mxu2 %v321_v3  ;;  %s277_s13 = scalar_lea.vmem %s1790_s1, %s1171_s28  ;;  %s1215_s14 = sshll.u32 %s1488_s19, 4  ;;  %v1265_v9 = vld [vmem:[%s1794_s5] ss:$0 sm:$0xff]  ;;  %v1266_v12 = vld [vmem:[%s1794_s5 + $0x1] ss:$0 sm:$0xff] }
  0x17   : > { %v283_v6 = vld [vmem:[%s277_s13] sm:$0xff]  ;;  %s273_s17 = scalar_lea.vmem %s1789_s0, %s1215_s14  ;;  %s1383_s19 = smov 8  }
  0x18   : > { %312 = vmatpush.msra.mxu0 %v286_v4  ;;  %1174 = vmatmul.msk.f32.vlgmr.msra.gmra.mxu2 %vm325_vm0, %v283_v6  ;;  %v1506_v7 = vld [vmem:[%s273_s17] sm:$0xff]  ;;  %v1510_v8 = vld [vmem:[%s273_s17 + $0x8] sm:$0xff]  ;;  %s1336_s28 = scalar_lea.hbm %s1795_s6, 32 }
  0x19   : > { %368 = vmatpush.msrb.mxu2 %v1176_v17  ;;  %v1264_v25 = vld [vmem:[%s280_s10] ss:$0 sm:$0xff]  ;;  %v1267_v32 = vld [vmem:[%s1794_s5 + $0x2] ss:$0 sm:$0xff]  ;;  %s1384_s10 = smov 16  }
  0x1a   : > { %313 = vmatpush.msra.mxu0 %v285_v5 }
  0x1b   : > { %1172 = vmatmul.msk.f32.vlgmr.msra.gmra.mxu0 %vm291_vm1, %v1506_v7  ;;  %369 = vmatpush.msrb.mxu2 %v1175_v18 }
  0x20   : > { %1177 = vmatmul.msk.f32.vlgmr.msrb.gmra.mxu2 %vm325_vm0, %v283_v6 }
  0x23   : > { %1173 = vmatmul.msk.f32.gmra.mxu0 %vm291_vm1, %v1510_v8 }
  0x98   : > { %v315_v10 = vpop.f32.mrf.mxu0 }
  0x99   : > { %v316_v11 = vadd.f32 %v1265_v9, %v315_v10 }
  0x9b   : > { %742 = vrot.lane.b32.xlu2 %v316_v11, %s1380_s29  ;;  %v346_v13 = vpop.f32.mrf.mxu2 }
  0x9c   : > { %v347_v14 = vadd.f32 %v1266_v12, %v346_v13 }
  0x9e   : > { %493 = vrot.lane.b32.xlu0 %v347_v14, %s1381_s9  ;;  %1178 = vmatpush.xpose.msk.msra.mxu3 %vm377_vm2, %v347_v14 }
  0xa0   : > { %v318_v15 = vpop.f32.mrf.mxu0 }
  0xa1   : > { %v319_v16 = vadd.f32 %v1265_v9, %v318_v15  ;;  %1179 = vmatmul.msk.f32.vlgmr.msra.gmra.mxu3 %vm377_vm2, %v316_v11 }
  0xa3   : > { %491 = vrot.lane.b32.xlu1 %v319_v16, %s1381_s9  ;;  %620 = vrot.lane.b32.xlu2 %v347_v14, %s1382_s11  ;;  %v371_v33 = vpop.f32.mrf.mxu2 }
  0xa4   : > { %v1557_v34 = vadd.f32 %v1267_v32, %v371_v33 }
  0xa6   : > { %489 = vrot.lane.b32.xlu0 %v316_v11, %s1381_s9  ;;  %479 = vmatpush.msra.mxu1 %v1557_v34 }
  0xa9   : > { %1180 = vmatmul.msk.f32.gmra.mxu3 %vm377_vm2, %v319_v16 }
  0xab   : > { %746 = vrot.lane.b32.xlu1 %v347_v14, %s1380_s29  ;;  %618 = vrot.lane.b32.xlu2 %v319_v16, %s1382_s11 }
  0xae   : > { %744 = vrot.lane.b32.xlu0 %v319_v16, %s1380_s29 }
  0xb3   : > { %616 = vrot.lane.b32.xlu1 %v316_v11, %s1382_s11 }
  0xf5   : > { %v743_v19 = vpop.permute.xlu2 %742 }
  0xfd   : > { %v621_v20 = vpop.permute.xlu2 %620 }
  0xfe   : > { %1188 = vmatpush.xpose.msk.msrb.mxu0 %vm377_vm2, %v621_v20 }
 0x105   : > { %v619_v30 = vpop.permute.xlu2 %618 }
 0x110   : > { %v494_v21 = vpop.permute.xlu0 %493 }
 0x111   : > { %1183 = vmatpush.xpose.msk.msra.mxu2 %vm377_vm2, %v494_v21 }
 0x115   : > { %v492_v22 = vpop.permute.xlu1 %491 }
 0x118   : > { %v490_v23 = vpop.permute.xlu0 %489 }
 0x119   : > { %1184 = vmatmul.msk.f32.vlgmr.msra.gmra.mxu2 %vm377_vm2, %v490_v23 }
 0x11d   : > { %v747_v24 = vpop.permute.xlu1 %746 }
 0x11e   : > { %1193 = vmatpush.xpose.msk.msrb.mxu2 %vm377_vm2, %v747_v24 }
 0x120   : > { %v745_v31 = vpop.permute.xlu0 %744 }
 0x121   : > { %1185 = vmatmul.msk.f32.gmra.mxu2 %vm377_vm2, %v492_v22 }
 0x124   : > { %v404_v27 = vpop.f32.mrf.mxu3 }
 0x125   : > { %v617_v26 = vpop.permute.xlu1 %616  ;;  %v405_v28 = vadd.f32 %v1264_v25, %v404_v27 }
 0x126   : > { %1189 = vmatmul.msk.f32.vlgmr.msrb.gmra.mxu0 %vm377_vm2, %v617_v26 }
 0x127   : > { %v410_v29 = vsel %vm377_vm2, %v405_v28, -inf }
 0x128   : > { %411 = vmax.xlane.f32.xlu1 %v410_v29 }
 0x129   : > { %1194 = vmatmul.msk.f32.vlgmr.msrb.gmra.mxu2 %vm377_vm2, %v743_v19 }
 0x12c   : > { %v407_v44 = vpop.f32.mrf.mxu3 }
 0x12d   : > { %v408_v45 = vadd.f32 %v1264_v25, %v407_v44 }
 0x12e   : > { %1190 = vmatmul.msk.f32.gmra.mxu0 %vm377_vm2, %v619_v30 }
 0x12f   : > { %v413_v51 = vsel %vm377_vm2, %v408_v45, -inf }
 0x131   : > { %1195 = vmatmul.msk.f32.gmra.mxu2 %vm377_vm2, %v745_v31 }
 0x19b   : > { %v412_v46 = vpop.xlane.xlu1 %411 }
 0x19c   : > { %v518_v35 = vpop.f32.mrf.mxu2  ;;  %v416_v49 = vsub.f32 %v405_v28, %v412_v46 }
 0x19d   : > { %v519_v36 = vadd.f32 %v1264_v25, %v518_v35 }
 0x19e   : > { %v418_v53 = vmul.f32 1.442695, %v416_v49 }
 0x19f   : > { %v524_v37 = vsel %vm377_vm2, %v519_v36, -inf }
 0x1a0   : > { %525 = vmax.xlane.f32.xlu0 %v524_v37  ;;  %1274 = vpow2.f32 %v418_v53 }
 0x1a3   : > { %v645_v38 = vpop.f32.mrf.mxu0 }
 0x1a4   : > { %v646_v39 = vadd.f32 %v1264_v25, %v645_v38  ;;  %v521_v40 = vpop.f32.mrf.mxu2 }
 0x1a5   : > { %v522_v42 = vadd.f32 %v1264_v25, %v521_v40 }
 0x1a6   : > { %v651_v41 = vsel %vm377_vm2, %v646_v39, -inf  ;;  %v1567_v59 = vpop.eup %1274 }
 0x1a7   : > { %652 = vmax.xlane.f32.xlu1 %v651_v41  ;;  %v527_v43 = vsel %vm377_vm2, %v522_v42, -inf  ;;  %v422_v60 = vsel %vm377_vm2, %v1567_v59, 0.0 }
 0x1a8   : > { %528 = vmax.xlane.f32.xlu2 %v527_v43 }
 0x1ab   : > { %v648_v52 = vpop.f32.mrf.mxu0 }
 0x1ac   : > { %v771_v47 = vpop.f32.mrf.mxu2  ;;  %v649_v54 = vadd.f32 %v1264_v25, %v648_v52 }
 0x1ad   : > { %v772_v48 = vadd.f32 %v1264_v25, %v771_v47 }
 0x1ae   : > { %v654_v57 = vsel %vm377_vm2, %v649_v54, -inf }
 0x1af   : > { %v777_v50 = vsel %vm377_vm2, %v772_v48, -inf }
 0x1b0   : > { %778 = vmax.xlane.f32.xlu0 %v777_v50  ;;  %414 = vmax.xlane.f32.xlu2 %v413_v51 }
 0x1b4   : > { %v774_v55 = vpop.f32.mrf.mxu2 }
 0x1b5   : > { %v775_v56 = vadd.f32 %v1264_v25, %v774_v55 }
 0x1b7   : > { %v780_v58 = vsel %vm377_vm2, %v775_v56, -inf }
 0x1b8   : > { %655 = vmax.xlane.f32.xlu0 %v654_v57  ;;  %781 = vmax.xlane.f32.xlu2 %v780_v58 }
 0x1c0   : > { %423 = vadd.xlane.f32.xlu2 %v422_v60 }
 0x213   : > { %v526_v61 = vpop.xlane.xlu0 %525 }
 0x214   : > { %v530_v10 = vsub.f32 %v519_v36, %v526_v61 }
 0x216   : > { %v532_v12 = vmul.f32 1.442695, %v530_v10 }
 0x21a   : > { %v653_v14 = vpop.xlane.xlu1 %652 }
 0x21b   : > { %v529_v62 = vpop.xlane.xlu2 %528  ;;  %v657_v19 = vsub.f32 %v646_v39, %v653_v14 }
 0x21c   : > { %v531_v63 = vsub.f32 %v522_v42, %v529_v62 }
 0x21d   : > { %v659_v22 = vmul.f32 1.442695, %v657_v19 }
 0x21e   : > { %v534_v0 = vmul.f32 1.442695, %v531_v63 }
 0x220   : > { %1276 = vpow2.f32 %v534_v0 }
 0x223   : > { %v779_v1 = vpop.xlane.xlu0 %778  ;;  %v415_v2 = vpop.xlane.xlu2 %414 }
 0x224   : > { %v783_v3 = vsub.f32 %v772_v48, %v779_v1  ;;  %v417_v4 = vsub.f32 %v408_v45, %v415_v2 }
 0x226   : > { %v1571_v5 = vpop.eup %1276  ;;  %v785_v6 = vmul.f32 1.442695, %v783_v3  ;;  %v420_v9 = vmul.f32 1.442695, %v417_v4 }
 0x227   : > { %v539_v11 = vsel %vm377_vm2, %v1571_v5, 0.0 }
 0x228   : > { %1278 = vpow2.f32 %v785_v6  ;;  %540 = vadd.xlane.f32.xlu0 %v539_v11 }
 0x229   : > { %1280 = vpow2.f32 %v420_v9 }
 0x22a   : > { %1282 = vpow2.f32 %v532_v12 }
 0x22b   : > { %v782_v13 = vpop.xlane.xlu2 %781  ;;  %v656_v24 = vpop.xlane.xlu0 %655 }
 0x22c   : > { %v784_v15 = vsub.f32 %v775_v56, %v782_v13  ;;  %v658_v27 = vsub.f32 %v649_v54, %v656_v24 }
 0x22e   : > { %v1575_v16 = vpop.eup %1278  ;;  %v787_v17 = vmul.f32 1.442695, %v784_v15  ;;  %v661_v31 = vmul.f32 1.442695, %v658_v27 }
 0x22f   : > { %v1577_v18 = vpop.eup %1280  ;;  %v789_v20 = vsel %vm377_vm2, %v1575_v16, 0.0 }
 0x230   : > { %v425_v21 = vsel %vm377_vm2, %v1577_v18, 0.0  ;;  %790 = vadd.xlane.f32.xlu2 %v789_v20  ;;  %1284 = vpow2.f32 %v787_v17  ;;  %v1583_v25 = vpop.eup %1282 }
 0x231   : > { %426 = vadd.xlane.f32.xlu1 %v425_v21  ;;  %v536_v28 = vsel %vm377_vm2, %v1583_v25, 0.0 }
 0x233   : > { %v424_v23 = vpop.xlane.xlu2 %423 }
 0x234   : > { %1286 = vrcp.f32 %v424_v23  ;;  %v439_v36 = vand.u32 2147483648, %v424_v23  ;;  %v437_v38 = vand.u32 2147483647, %v424_v23  ;;  %vm433_vm4 = vweird.f32 %v424_v23 }
 0x235   : > { %1288 = vpow2.f32 %v659_v22 }
 0x236   : > { %v1585_v26 = vpop.eup %1284  ;;  %1290 = vpow2.f32 %v661_v31  ;;  %v440_v41 = vor.u32 1.1754944e-38, %v439_v36  ;;  %vm438_vm6 = vcmp.eq.f32.partialorder %v437_v38, 8.507059e+37 }
 0x237   : > { %v792_v29 = vsel %vm377_vm2, %v1585_v26, 0.0 }
 0x238   : > { %793 = vadd.xlane.f32.xlu2 %v792_v29 }
 0x239   : > { %537 = vadd.xlane.f32.xlu1 %v536_v28 }
 0x23a   : > { %v1287_v30 = vpop.eup %1286 }
 0x23b   : > { %v429_v32 = vmul.f32 %v1287_v30, %v424_v23  ;;  %v1593_v33 = vpop.eup %1288  ;;  %vm434_vm3 = vweird.f32 %v1287_v30 }
 0x23c   : > { %573 = vrot.lane.b32.xlu0 %v1557_v34, %s1381_s9  ;;  %v663_v39 = vsel %vm377_vm2, %v1593_v33, 0.0  ;;  %vm435_vm5 = vmor %vm433_vm4, %vm434_vm3  ;;  %v1597_v44 = vpop.eup %1290  ;;  %s1216_s9 = sshll.u32 %s1444_s25, 4  ;;  %s1066_s25 = scalar_lea.sflag [#allocation4], %s266_s18 }
 0x23d   : > { %v430_v35 = vsub.f32 1.0, %v429_v32  ;;  %v666_v46 = vsel %vm377_vm2, %v1597_v44, 0.0  ;;  %s1077_s14 = scalar_lea.hbm %s1795_s6, %s1216_s9 }
 0x23e   : > { %s1080_s16 = sshll.u32 %s1077_s14, 4  ;;  %s1081_s16 = int_to_ptr.hbm [resolvable:$true] %s1080_s16 }
 0x23f   : > { %v431_v37 = vmul.f32 %v1287_v30, %v430_v35  ;;  %s1330_s17 = sshra.s32 %s1081_s16, 4  ;;  %s1331_s17 = int_to_ptr.hbm [resolvable:$true] %s1330_s17 }
 0x240   : > { %s1332_s20 = scalar_lea.hbm %s1331_s17, 16  ;;  %p1337_p0 = scmp.lt.s32.totalorder %s1331_s17, %s1795_s6 }
 0x241   : > { %664 = vadd.xlane.f32.xlu1 %v663_v39  ;;  %v432_v40 = vadd.f32 %v1287_v30, %v431_v37  ;;  %p1333_p11 = scmp.ne.s32.totalorder %s1331_s17, %s1332_s20  ;;  %p1338_p1 = scmp.lt.s32.totalorder %s1336_s28, %s1332_s20 }
 0x243   : > { %v436_v42 = vsel %vm435_vm5, %v1287_v30, %v432_v40  ;;  %p1334_p12 = pnand %p1333_p11, %p1461_p5  ;;  %p1339_p2 = por %p1338_p1, %p1337_p0 }
 0x244   : > { %v441_v43 = vsel %vm438_vm6, %v440_v41, %v436_v42 }
 0x245   : > { %v456_v45 = vmul.f32 %v1567_v59, %v441_v43  ;;  %p1335_p13 = pneg %p1334_p12 }
 0x247   : > { %1181 = vmatmul.msk.f32.vlgmr.msra.gmra.mxu1 %vm377_vm2, %v456_v45  ;;  %p1340_p3 = pnand %p1339_p2, %p1335_p13 }
 0x249   : > { %667 = vadd.xlane.f32.xlu1 %v666_v46 }
 0x250   : > { %825 = vrot.lane.b32.xlu2 %v1557_v34, %s1380_s29  ;;  %s1168_s29 = sshll.u32 %s266_s18, 4 }
 0x262   : > { %699 = vrot.lane.b32.xlu1 %v1557_v34, %s1382_s11  ;;  %s268_s11 = scalar_lea.vmem [#allocation3], %s1168_s29 }
 0x263   : > { %s1078_s15 = sshll.u32 %s268_s11, 4  ;;  %s1079_s15 = int_to_ptr.vmem [resolvable:$true] %s1078_s15 }
 0x29b   : > { %v1607_v47 = vpop.xlane.xlu0 %540 }
 0x29c   : > { %v567_v27 = vand.u32 2147483648, %v1607_v47  ;;  %vm561_vm0 = vweird.f32 %v1607_v47  ;;  %v565_v31 = vand.u32 2147483647, %v1607_v47 }
 0x29e   : > { %v568_v37 = vor.u32 1.1754944e-38, %v567_v27  ;;  %vm566_vm4 = vcmp.eq.f32.partialorder %v565_v31, 8.507059e+37 }
 0x2a3   : > { %v1609_v48 = vpop.xlane.xlu2 %790 }
 0x2a4   : > { %v427_v49 = vpop.xlane.xlu1 %426  ;;  %v806_v43 = vand.u32 2147483648, %v1609_v48  ;;  %vm800_vm6 = vweird.f32 %v1609_v48 }
 0x2a5   : > { %1292 = vrcp.f32 %v427_v49  ;;  %v453_v58 = vand.u32 2147483648, %v427_v49  ;;  %v451_v59 = vand.u32 2147483647, %v427_v49  ;;  %vm447_vm8 = vweird.f32 %v427_v49 }
 0x2a6   : > { %1294 = vrcp.f32 %v1607_v47 }
 0x2a7   : > { %v454_v63 = vor.u32 1.1754944e-38, %v453_v58  ;;  %vm452_vm10 = vcmp.eq.f32.partialorder %v451_v59, 8.507059e+37 }
 0x2ab   : > { %v1293_v50 = vpop.eup %1292  ;;  %v1614_v53 = vpop.xlane.xlu2 %793 }
 0x2ac   : > { %v1612_v51 = vpop.eup %1294  ;;  %v443_v52 = vmul.f32 %v1293_v50, %v427_v49  ;;  %v538_v54 = vpop.xlane.xlu1 %537  ;;  %vm448_vm7 = vweird.f32 %v1293_v50 }
 0x2ad   : > { %1296 = vrcp.f32 %v538_v54  ;;  %v557_v34 = vmul.f32 %v1612_v51, %v1607_v47  ;;  %vm449_vm9 = vmor %vm447_vm8, %vm448_vm7  ;;  %v553_v12 = vand.u32 2147483648, %v538_v54  ;;  %v551_v15 = vand.u32 2147483647, %v538_v54 }
 0x2ae   : > { %v444_v55 = vsub.f32 1.0, %v443_v52  ;;  %v574_v56 = vpop.permute.xlu0 %573  ;;  %1298 = vrcp.f32 %v1609_v48  ;;  %vm547_vm12 = vweird.f32 %v538_v54  ;;  %vm562_vm14 = vweird.f32 %v1612_v51 }
 0x2af   : > { %597 = vmatpush.msrb.mxu3 %v574_v56  ;;  %v558_v62 = vsub.f32 1.0, %v557_v34  ;;  %v554_v20 = vor.u32 1.1754944e-38, %v553_v12  ;;  %vm552_vm15 = vcmp.eq.f32.partialorder %v551_v15, 8.507059e+37  ;;  %vm563_vm3 = vmor %vm561_vm0, %vm562_vm14  ;;  %v804_v47 = vand.u32 2147483647, %v1609_v48 }
 0x2b0   : > { %v445_v57 = vmul.f32 %v1293_v50, %v444_v55  ;;  %v807_v52 = vor.u32 1.1754944e-38, %v806_v43  ;;  %v1386_v43 = vmov 32.0  }
 0x2b1   : > { %v559_v11 = vmul.f32 %v1612_v51, %v558_v62  ;;  %v818_v62 = vand.u32 2147483647, %v1614_v53 }
 0x2b2   : > { %v446_v60 = vadd.f32 %v1293_v50, %v445_v57  ;;  %v820_v57 = vand.u32 2147483648, %v1614_v53 }
 0x2b3   : > { %v1297_v61 = vpop.eup %1296  ;;  %v826_v0 = vpop.permute.xlu2 %825  ;;  %v560_v21 = vadd.f32 %v1612_v51, %v559_v11 }
 0x2b4   : > { %v1619_v1 = vpop.xlane.xlu1 %664  ;;  %v450_v2 = vsel %vm449_vm9, %v1293_v50, %v446_v60  ;;  %v543_v3 = vmul.f32 %v1297_v61, %v538_v54  ;;  %849 = vmatpush.msra.mxu3 %v826_v0  ;;  %v1622_v4 = vpop.eup %1298  ;;  %vm548_vm11 = vweird.f32 %v1297_v61  ;;  %vm805_vm9 = vcmp.eq.f32.partialorder %v804_v47, 8.507059e+37 }
 0x2b5   : > { %1300 = vrcp.f32 %v1619_v1  ;;  %v455_v6 = vsel %vm452_vm10, %v454_v63, %v450_v2  ;;  %v796_v13 = vmul.f32 %v1622_v4, %v1609_v48  ;;  %vm549_vm13 = vmor %vm547_vm12, %vm548_vm11  ;;  %v564_v36 = vsel %vm563_vm3, %v1612_v51, %v560_v21  ;;  %v1200_v21 = vld [vmem:[%s1792_s3 + $0x30] sm:$0xff] }
 0x2b6   : > { %v544_v9 = vsub.f32 1.0, %v543_v3  ;;  %v457_v10 = vmul.f32 %v1577_v18, %v455_v6  ;;  %1302 = vrcp.f32 %v1614_v53  ;;  %v569_v41 = vsel %vm566_vm4, %v568_v37, %v564_v36 }
 0x2b7   : > { %v797_v22 = vsub.f32 1.0, %v796_v13  ;;  %vm801_vm5 = vweird.f32 %v1622_v4  ;;  %v571_v49 = vmul.f32 %v1571_v5, %v569_v41  ;;  %v680_v56 = vand.u32 2147483648, %v1619_v1 }
 0x2b8   : > { %v545_v14 = vmul.f32 %v1297_v61, %v544_v9  ;;  %1182 = vmatmul.msk.f32.gmra.mxu1 %vm377_vm2, %v457_v10  ;;  %vm802_vm7 = vmor %vm800_vm6, %vm801_vm5  ;;  %vm674_vm10 = vweird.f32 %v1619_v1  ;;  %v678_v5 = vand.u32 2147483647, %v1619_v1  ;;  %vm819_vm3 = vcmp.eq.f32.partialorder %v818_v62, 8.507059e+37 }
 0x2b9   : > { %v798_v32 = vmul.f32 %v1622_v4, %v797_v22  ;;  %v681_v60 = vor.u32 1.1754944e-38, %v680_v56  ;;  %v1199_v22 = vld [vmem:[%s1792_s3 + $0x28] sm:$0xff] }
 0x2ba   : > { %v546_v19 = vadd.f32 %v1297_v61, %v545_v14  ;;  %vm679_vm14 = vcmp.eq.f32.partialorder %v678_v5, 8.507059e+37 }
 0x2bb   : > { %v1630_v17 = vpop.eup %1300 }
 0x2bc   : > { %v1632_v18 = vpop.xlane.xlu1 %667  ;;  %v550_v23 = vsel %vm549_vm13, %v1297_v61, %v546_v19  ;;  %v1637_v24 = vpop.eup %1302  ;;  %v670_v28 = vmul.f32 %v1630_v17, %v1619_v1  ;;  %vm675_vm8 = vweird.f32 %v1630_v17  ;;  %vm814_vm13 = vweird.f32 %v1614_v53 }
 0x2bd   : > { %1304 = vrcp.f32 %v1632_v18  ;;  %v555_v29 = vsel %vm552_vm15, %v554_v20, %v550_v23  ;;  %v810_v35 = vmul.f32 %v1637_v24, %v1614_v53  ;;  %vm676_vm11 = vmor %vm674_vm10, %vm675_vm8  ;;  %vm815_vm12 = vweird.f32 %v1637_v24  ;;  %v1198_v23 = vld [vmem:[%s1792_s3 + $0x20] sm:$0xff] }
 0x2be   : > { %v570_v30 = vmul.f32 %v1583_v25, %v555_v29  ;;  %v671_v38 = vsub.f32 1.0, %v670_v28  ;;  %v799_v25 = vadd.f32 %v1622_v4, %v798_v32  ;;  %vm816_vm15 = vmor %vm814_vm13, %vm815_vm12  ;;  %v821_v1 = vor.u32 1.1754944e-38, %v820_v57 }
 0x2bf   : > { %v811_v42 = vsub.f32 1.0, %v810_v35  ;;  %v694_v3 = vand.u32 2147483648, %v1632_v18  ;;  %vm688_vm4 = vweird.f32 %v1632_v18  ;;  %v692_v53 = vand.u32 2147483647, %v1632_v18  ;;  %v1268_v35 = vld [vmem:[%s1794_s5 + $0x3] ss:$0 sm:$0xff] }
 0x2c0   : > { %1186 = vmatmul.msk.f32.vlgmr.msrb.gmra.mxu3 %vm377_vm2, %v570_v30  ;;  %v672_v45 = vmul.f32 %v1630_v17, %v671_v38  ;;  %v803_v50 = vsel %vm802_vm7, %v1622_v4, %v799_v25  ;;  %vm613_vm7 = vcmask 130112   ;;  %vm865_vm8 = vcmask 261312  }
 0x2c1   : > { %v812_v51 = vmul.f32 %v1637_v24, %v811_v42  ;;  %v808_v34 = vsel %vm805_vm9, %v807_v52, %v803_v50  ;;  %v695_v10 = vor.u32 1.1754944e-38, %v694_v3  ;;  %vm693_vm6 = vcmp.eq.f32.partialorder %v692_v53, 8.507059e+37 }
 0x2c2   : > { %v673_v54 = vadd.f32 %v1630_v17, %v672_v45  ;;  %v823_v61 = vmul.f32 %v1575_v16, %v808_v34  ;;  %1306 = vrcp.f32 %v1386_v43 }
 0x2c3   : > { %v1305_v39 = vpop.eup %1304  ;;  %v813_v48 = vadd.f32 %v1637_v24, %v812_v51 }
 0x2c4   : > { %v481_v40 = vpop.f32.mrf.mxu1  ;;  %v684_v46 = vmul.f32 %v1305_v39, %v1632_v18  ;;  %v677_v59 = vsel %vm676_vm11, %v1630_v17, %v673_v54  ;;  %vm689_vm0 = vweird.f32 %v1305_v39  ;;  %v1201_v18 = vld [vmem:[%s1792_s3 + $0x38] sm:$0xff] }
 0x2c5   : > { %487 = vst.msk [vmem:[#allocation2] sm:$0xff] %vm377_vm2, %v481_v40  ;;  %v682_v63 = vsel %vm679_vm14, %v681_v60, %v677_v59  ;;  %v817_v0 = vsel %vm816_vm15, %v1637_v24, %v813_v48  ;;  %vm690_vm5 = vmor %vm688_vm4, %vm689_vm0  ;;  %895 = vmatpush.msra.mxu0 %v1201_v18  ;;  %v1206_v59 = vld [vmem:[%s1792_s3 + $0x50] sm:$0xff]  ;;  %v1205_v60 = vld [vmem:[%s1792_s3 + $0x48] sm:$0xff] }
 0x2c6   : > { %v685_v55 = vsub.f32 1.0, %v684_v46  ;;  %v697_v16 = vmul.f32 %v1593_v33, %v682_v63  ;;  %v822_v6 = vsel %vm819_vm3, %v821_v1, %v817_v0 }
 0x2c7   : > { %v824_v11 = vmul.f32 %v1585_v26, %v822_v6  ;;  %896 = vmatpush.msra.mxu0 %v1200_v21 }
 0x2c8   : > { %1187 = vmatmul.msk.f32.gmra.mxu3 %vm377_vm2, %v571_v49  ;;  %v686_v58 = vmul.f32 %v1305_v39, %v685_v55  ;;  %v1307_v45 = vpop.eup %1306 }
 0x2c9   : > { %897 = vmatpush.msra.mxu0 %v1199_v22  ;;  %v915_v46 = vmul.f32 32.0, %v1307_v45  ;;  %vm919_vm9 = vweird.f32 %v1307_v45 }
 0x2ca   : > { %v687_v2 = vadd.f32 %v1305_v39, %v686_v58  ;;  %v1207_v58 = vld [vmem:[%s1792_s3 + $0x58] sm:$0xff] }
 0x2cb   : > { %898 = vmatpush.msra.mxu0 %v1198_v23  ;;  %v916_v47 = vsub.f32 1.0, %v915_v46 }
 0x2cc   : > { %v691_v9 = vsel %vm690_vm5, %v1305_v39, %v687_v2 }
 0x2cd   : > { %v696_v12 = vsel %vm693_vm6, %v695_v10, %v691_v9  ;;  %v917_v49 = vmul.f32 %v1307_v45, %v916_v47 }
 0x2ce   : > { %v698_v13 = vmul.f32 %v1597_v44, %v696_v12 }
 0x2cf   : > { %v918_v50 = vadd.f32 %v1307_v45, %v917_v49 }
 0x2d0   : > { %1196 = vmatmul.msk.f32.vlgmr.msra.gmra.mxu3 %vm377_vm2, %v823_v61  ;;  %v1204_v61 = vld [vmem:[%s1792_s3 + $0x40] sm:$0xff] }
 0x2d1   : > { %v1709_v51 = vsel %vm919_vm9, %v1307_v45, %v918_v50 }
 0x2d4   : > { %v700_v4 = vpop.permute.xlu1 %699 }
 0x2d5   : > { %723 = vmatpush.msrb.mxu1 %v700_v4 }
 0x2d6   : > { %1191 = vmatmul.msk.f32.vlgmr.msrb.gmra.mxu1 %vm377_vm2, %v697_v16 }
 0x2d7   : > { %992 = vmatpush.msra.mxu1 %v1207_v58 }
 0x2d8   : > { %1197 = vmatmul.msk.f32.gmra.mxu3 %vm377_vm2, %v824_v11 }
 0x2d9   : > { %993 = vmatpush.msra.mxu1 %v1206_v59 }
 0x2db   : > { %994 = vmatpush.msra.mxu1 %v1205_v60 }
 0x2dd   : > { %995 = vmatpush.msra.mxu1 %v1204_v61 }
 0x2de   : > { %1192 = vmatmul.msk.f32.gmra.mxu1 %vm377_vm2, %v698_v13  ;;  %v1269_v13 = vld [vmem:[%s1794_s5 + $0x4] ss:$0 sm:$0xff] }
 0x335   : > { %v484_v33 = vpop.f32.mrf.mxu1 }
 0x336   : > { %488 = vst.msk [vmem:[#allocation2 + $0x8] sm:$0xff] %vm377_vm2, %v484_v33  ;;  %vm739_vm2 = vcmask 195712  }
 0x343   : > { %v599_v14 = vpop.f32.mrf.mxu3 }
 0x34b   : > { %v602_v15 = vpop.f32.mrf.mxu3 }
 0x34c   : > { %609 = vrot.lane.b32.xlu2 %v602_v15, %s1383_s19 }
 0x353   : > { %v725_v17 = vpop.f32.mrf.mxu1  ;;  %v851_v19 = vpop.f32.mrf.mxu3 }
 0x354   : > { %733 = vrot.lane.b32.xlu0 %v725_v17, %s1384_s10  ;;  %v1270_v17 = vld [vmem:[%s1794_s5 + $0x5] ss:$0 sm:$0xff] }
 0x35b   : > { %v728_v26 = vpop.f32.mrf.mxu1  ;;  %v854_v44 = vpop.f32.mrf.mxu3 }
 0x35c   : > { %607 = vrot.lane.b32.xlu0 %v599_v14, %s1383_s19  ;;  %735 = vrot.lane.b32.xlu1 %v728_v26, %s1384_s10 }
 0x364   : > { %859 = vrot.lane.b32.xlu0 %v851_v19, %s1385_s26 }
 0x36c   : > { %861 = vrot.lane.b32.xlu0 %v854_v44, %s1385_s26 }
 0x3a6   : > { %v610_v20 = vpop.permute.xlu2 %609 }
 0x3a7   : > { %615 = vst.msk [vmem:[#allocation2 + $0x8] sm:$0xff] %vm613_vm7, %v610_v20 }
 0x3c6   : > { %v734_v24 = vpop.permute.xlu0 %733 }
 0x3ce   : > { %v608_v27 = vpop.permute.xlu0 %607  ;;  %v736_v28 = vpop.permute.xlu1 %735 }
 0x3cf   : > { %614 = vst.msk [vmem:[#allocation2] sm:$0xff] %vm613_vm7, %v608_v27  ;;  %v1271_v27 = vld [vmem:[%s1794_s5 + $0x6] ss:$0 sm:$0xff] }
 0x3d0   : > { %741 = vst.msk [vmem:[#allocation2 + $0x8] sm:$0xff] %vm739_vm2, %v736_v28 }
 0x3d1   : > { %740 = vst.msk [vmem:[#allocation2] sm:$0xff] %vm739_vm2, %v734_v24 }
 0x3d6   : > { %v860_v29 = vpop.permute.xlu0 %859 }
 0x3d7   : > { %866 = vst.msk [vmem:[#allocation2] sm:$0xff] %vm865_vm8, %v860_v29 }
 0x3de   : > { %v862_v30 = vpop.permute.xlu0 %861  ;;  %v868_v31 = vld [vmem:[#allocation2] sm:$0xff] }
 0x3df   : > { %867 = vst.msk [vmem:[#allocation2 + $0x8] sm:$0xff] %vm865_vm8, %v862_v30  ;;  %1202 = vmatmul.msk.f32.vlgmr.msra.gmra.mxu0 %vm291_vm1, %v868_v31 }
 0x3e6   : > { %v869_v32 = vld [vmem:[#allocation2 + $0x8] sm:$0xff] }
 0x3e7   : > { %1203 = vmatmul.msk.f32.gmra.mxu0 %vm291_vm1, %v869_v32 }
 0x45c   : > { %v900_v36 = vpop.f32.mrf.mxu0 }
 0x45d   : > { %v901_v37 = vadd.f32 %v1268_v35, %v900_v36 }
 0x45f   : > { %v906_v38 = vadd.f32 %v901_v37, %v1506_v7 }
 0x461   : > { %v908_v39 = vsel %vm291_vm1, %v906_v38, 0.0 }
 0x462   : > { %909 = vadd.xlane.f32.xlu2 %v908_v39 }
 0x464   : > { %v903_v40 = vpop.f32.mrf.mxu0 }
 0x465   : > { %v904_v41 = vadd.f32 %v1268_v35, %v903_v40 }
 0x467   : > { %v907_v25 = vadd.f32 %v904_v41, %v1510_v8 }
 0x469   : > { %v911_v42 = vsel %vm291_vm1, %v907_v25, 0.0 }
 0x46a   : > { %912 = vadd.xlane.f32.xlu1 %v911_v42 }
 0x4d5   : > { %v910_v7 = vpop.xlane.xlu2 %909 }
 0x4d6   : > { %v921_v52 = vmul.f32 %v1709_v51, %v910_v7 }
 0x4d8   : > { %v923_v54 = vsub.f32 %v906_v38, %v921_v52 }
 0x4da   : > { %v925_v55 = vmul.f32 %v923_v54, %v923_v54 }
 0x4dc   : > { %v927_v8 = vsel %vm291_vm1, %v925_v55, 0.0 }
 0x4dd   : > { %928 = vadd.xlane.f32.xlu0 %v927_v8  ;;  %v913_v56 = vpop.xlane.xlu1 %912 }
 0x4de   : > { %v922_v34 = vmul.f32 %v1709_v51, %v913_v56 }
 0x4e0   : > { %v924_v5 = vsub.f32 %v907_v25, %v922_v34 }
 0x4e2   : > { %v926_v48 = vmul.f32 %v924_v5, %v924_v5 }
 0x4e4   : > { %v930_v57 = vsel %vm291_vm1, %v926_v48, 0.0 }
 0x4e5   : > { %931 = vadd.xlane.f32.xlu2 %v930_v57 }
 0x550   : > { %v929_v62 = vpop.xlane.xlu0 %928 }
 0x551   : > { %v933_v63 = vmul.f32 %v929_v62, %v1709_v51 }
 0x553   : > { %v935_v0 = vadd.f32 1e-05, %v933_v63 }
 0x555   : > { %1308 = vrsqrt.f32 %v935_v0  ;;  %vm943_vm11 = vweird.f32 %v935_v0 }
 0x558   : > { %v932_v1 = vpop.xlane.xlu2 %931 }
 0x559   : > { %v934_v2 = vmul.f32 %v932_v1, %v1709_v51 }
 0x55b   : > { %v1309_v3 = vpop.eup %1308  ;;  %v936_v4 = vadd.f32 1e-05, %v934_v2  ;;  %v1273_v2 = vld [vmem:[%s1794_s5 + $0x8] ss:$0 sm:$0xff] }
 0x55c   : > { %v938_v16 = vmul.f32 %v1309_v3, %v935_v0  ;;  %vm944_vm10 = vweird.f32 %v1309_v3  ;;  %v1272_v0 = vld [vmem:[%s1794_s5 + $0x7] ss:$0 sm:$0xff] }
 0x55d   : > { %1310 = vrsqrt.f32 %v936_v4  ;;  %vm945_vm12 = vmor %vm943_vm11, %vm944_vm10  ;;  %vm953_vm14 = vweird.f32 %v936_v4 }
 0x55e   : > { %v939_v6 = vmul.f32 %v1309_v3, %v938_v16 }
 0x560   : > { %v940_v53 = vmul.f32 0.5, %v939_v6 }
 0x562   : > { %v941_v9 = vsub.f32 1.5, %v940_v53 }
 0x563   : > { %v1311_v10 = vpop.eup %1310 }
 0x564   : > { %v942_v11 = vmul.f32 %v1309_v3, %v941_v9  ;;  %v948_v12 = vmul.f32 %v1311_v10, %v936_v4  ;;  %vm954_vm13 = vweird.f32 %v1311_v10 }
 0x565   : > { %vm955_vm15 = vmor %vm953_vm14, %vm954_vm13 }
 0x566   : > { %v946_v33 = vsel %vm945_vm12, %v1309_v3, %v942_v11  ;;  %v949_v14 = vmul.f32 %v1311_v10, %v948_v12 }
 0x567   : > { %v957_v15 = vmul.f32 %v946_v33, %v923_v54 }
 0x568   : > { %v950_v26 = vmul.f32 0.5, %v949_v14 }
 0x569   : > { %v961_v19 = vmul.f32 %v1269_v13, %v957_v15 }
 0x56a   : > { %v951_v44 = vsub.f32 1.5, %v950_v26 }
 0x56b   : > { %v965_v20 = vadd.f32 %v1270_v17, %v961_v19 }
 0x56c   : > { %v952_v18 = vmul.f32 %v1311_v10, %v951_v44 }
 0x56d   : > { %1208 = vmatmul.msk.f32.vlgmr.msra.gmra.mxu1 %vm291_vm1, %v965_v20 }
 0x56e   : > { %v956_v21 = vsel %vm955_vm15, %v1311_v10, %v952_v18 }
 0x56f   : > { %v958_v22 = vmul.f32 %v956_v21, %v924_v5 }
 0x571   : > { %v962_v23 = vmul.f32 %v1269_v13, %v958_v22 }
 0x573   : > { %v966_v24 = vadd.f32 %v1270_v17, %v962_v23 }
 0x575   : > { %1209 = vmatmul.msk.f32.gmra.mxu1 %vm291_vm1, %v966_v24 }
 0x5ea   : > { %v997_v28 = vpop.f32.mrf.mxu1 }
 0x5eb   : > { %v998_v29 = vadd.f32 %v1271_v27, %v997_v28 }
 0x5ed   : > { %vm1003_vm0 = vcmp.ge.f32.partialorder %v998_v29, 0.0  ;;  %v1005_v30 = vmul.f32 0.01, %v998_v29 }
 0x5ef   : > { %v1007_v31 = vsel %vm1003_vm0, %v998_v29, %v1005_v30 }
 0x5f0   : > { %v1009_v32 = vadd.f32 %v1007_v31, %v965_v20 }
 0x5f2   : > { %v1000_v35 = vpop.f32.mrf.mxu1  ;;  %v1011_v36 = vsel %vm291_vm1, %v1009_v32, 0.0 }
 0x5f3   : > { %v1001_v37 = vadd.f32 %v1271_v27, %v1000_v35  ;;  %1012 = vadd.xlane.f32.xlu1 %v1011_v36 }
 0x5f5   : > { %vm1004_vm3 = vcmp.ge.f32.partialorder %v1001_v37, 0.0  ;;  %v1006_v38 = vmul.f32 0.01, %v1001_v37 }
 0x5f7   : > { %v1008_v39 = vsel %vm1004_vm3, %v1001_v37, %v1006_v38 }
 0x5f8   : > { %v1010_v40 = vadd.f32 %v1008_v39, %v966_v24 }
 0x5fa   : > { %v1014_v41 = vsel %vm291_vm1, %v1010_v40, 0.0 }
 0x5fb   : > { %1015 = vadd.xlane.f32.xlu0 %v1014_v41 }
 0x666   : > { %v1013_v25 = vpop.xlane.xlu1 %1012 }
 0x667   : > { %v1017_v42 = vmul.f32 %v1013_v25, %v1709_v51 }
 0x669   : > { %v1019_v43 = vsub.f32 %v1009_v32, %v1017_v42 }
 0x66b   : > { %v1021_v45 = vmul.f32 %v1019_v43, %v1019_v43 }
 0x66d   : > { %v1023_v46 = vsel %vm291_vm1, %v1021_v45, 0.0 }
 0x66e   : > { %v1016_v47 = vpop.xlane.xlu0 %1015  ;;  %1024 = vadd.xlane.f32.xlu2 %v1023_v46 }
 0x66f   : > { %v1018_v49 = vmul.f32 %v1016_v47, %v1709_v51 }
 0x671   : > { %v1020_v50 = vsub.f32 %v1010_v40, %v1018_v49 }
 0x673   : > { %v1022_v7 = vmul.f32 %v1020_v50, %v1020_v50 }
 0x675   : > { %v1026_v52 = vsel %vm291_vm1, %v1022_v7, 0.0 }
 0x676   : > { %1027 = vadd.xlane.f32.xlu1 %v1026_v52 }
 0x6e1   : > { %v1025_v54 = vpop.xlane.xlu2 %1024 }
 0x6e2   : > { %v1029_v55 = vmul.f32 %v1025_v54, %v1709_v51 }
 0x6e4   : > { %v1031_v8 = vadd.f32 1e-05, %v1029_v55 }
 0x6e6   : > { %1312 = vrsqrt.f32 %v1031_v8  ;;  %vm1039_vm5 = vweird.f32 %v1031_v8 }
 0x6e9   : > { %v1028_v56 = vpop.xlane.xlu1 %1027 }
 0x6ea   : > { %v1030_v34 = vmul.f32 %v1028_v56, %v1709_v51 }
 0x6ec   : > { %v1313_v5 = vpop.eup %1312  ;;  %v1032_v48 = vadd.f32 1e-05, %v1030_v34 }
 0x6ed   : > { %v1034_v57 = vmul.f32 %v1313_v5, %v1031_v8  ;;  %vm1040_vm4 = vweird.f32 %v1313_v5 }
 0x6ee   : > { %1314 = vrsqrt.f32 %v1032_v48  ;;  %vm1041_vm6 = vmor %vm1039_vm5, %vm1040_vm4  ;;  %vm1049_vm2 = vweird.f32 %v1032_v48 }
 0x6ef   : > { %v1035_v58 = vmul.f32 %v1313_v5, %v1034_v57 }
 0x6f1   : > { %v1036_v59 = vmul.f32 0.5, %v1035_v58 }
 0x6f3   : > { %v1037_v60 = vsub.f32 1.5, %v1036_v59 }
 0x6f4   : > { %v1315_v61 = vpop.eup %1314 }
 0x6f5   : > { %v1038_v62 = vmul.f32 %v1313_v5, %v1037_v60  ;;  %v1044_v63 = vmul.f32 %v1315_v61, %v1032_v48  ;;  %vm1050_vm7 = vweird.f32 %v1315_v61 }
 0x6f6   : > { %vm1051_vm8 = vmor %vm1049_vm2, %vm1050_vm7 }
 0x6f7   : > { %v1042_v51 = vsel %vm1041_vm6, %v1313_v5, %v1038_v62  ;;  %v1045_v1 = vmul.f32 %v1315_v61, %v1044_v63 }
 0x6f8   : > { %v1053_v3 = vmul.f32 %v1042_v51, %v1019_v43 }
 0x6f9   : > { %v1046_v4 = vmul.f32 0.5, %v1045_v1 }
 0x6fa   : > { %v1057_v16 = vmul.f32 %v1272_v0, %v1053_v3 }
 0x6fb   : > { %v1047_v6 = vsub.f32 1.5, %v1046_v4 }
 0x6fc   : > { %v1061_v53 = vadd.f32 %v1273_v2, %v1057_v16 }
 0x6fd   : > { %v1048_v9 = vmul.f32 %v1315_v61, %v1047_v6 }
 0x6fe   : > { %1063 = vst.msk [vmem:[%s268_s11] sm:$0xff] %vm291_vm1, %v1061_v53 }
 0x6ff   : > { %v1052_v10 = vsel %vm1051_vm8, %v1315_v61, %v1048_v9 }
 0x700   : > { %v1054_v11 = vmul.f32 %v1052_v10, %v1020_v50 }
 0x702   : > { %v1058_v12 = vmul.f32 %v1272_v0, %v1054_v11 }
 0x704   : > { %v1062_v13 = vadd.f32 %v1273_v2, %v1058_v12 }
 0x706   : > { %1064 = vst.msk [vmem:[%s268_s11 + $0x8] sm:$0xff] %vm291_vm1, %v1062_v13 }
 0x707   : > { %1343 = shalt.err (!%p1340_p3)
}
 0x708   : > { %s1387_s18 = smov 128  }
 0x709   : > { %1217 = dma.vmem_to_hbm [thread:$0]  (%p1461_p5), %s1079_s15, 256, %s1081_s16, %s1066_s25, %s1387_s18, %s1387_s18, %s1383_s19  }
 0x70a PF: > { %p1223_p4 = scmp.ge.s32.totalorder %s1378_s24, 2  ;;  %s1095_s11 = sand.u32 1, %s1366_s21  }
 0x70b   : > { %s1096_s12 = scalar_lea.sflag [#allocation4], %s1095_s11 }
 0x70c   : > { %p1220_p7 = pnand %p1223_p4, %p1465_p6 }
 0x70e   : > { %p1221_p8 = pneg %p1220_p7 }
 0x710   : > { %1361 = dma.done.wait (%p1221_p8), %s1096_s12, 256  }
 0x711   : > { %1363 = vsyncadd (%p1221_p8), %s1096_s12, 4294967040  ;;  %p16_p9 = scmp.ge.s32.totalorder %s1448_s27, 4   ;;  %s1798_s21 = smov %s1370_s22 }
 0x712   : > { %s1799_s22 = smov %s1374_s23  ;;  %s1800_s23 = smov %s1459_s30 }
 0x713   : > { %s1801_s24 = smov %s1448_s27  ;;  %18 = sbr.rel (!%p16_p9) target bundleno = 3 (0x3), region = 88 }
 0x718   :  { %1102 = vsyncpa [#allocation4], 1 }
 0x719   :  { %1104 = vsyncpa [#allocation4 + $0x1], 1 }

</bundles_post_ra>
